<compile_context>
chip_gen: v5e
topology: v5e:2x2
jax: 0.10.0
libtpu: 0.0.40
codegen_flags: <defaults>
</compile_context>

<pallas_src>
import jax
import jax.numpy as jnp
from jax.experimental import pallas as pl
from jax.experimental.pallas import tpu as pltpu

BN_EPS = 1e-5


def _bn(h, gamma, beta):
    """Training-mode BatchNorm1d, two-pass (numerically stable) biased batch stats."""
    n = h.shape[0]
    inv_n = 1.0 / float(n)
    mean = jnp.sum(h, axis=0, keepdims=True) * inv_n
    d = h - mean
    var = jnp.sum(d * d, axis=0, keepdims=True) * inv_n
    scale = gamma * jax.lax.rsqrt(var + BN_EPS)
    return d * scale + beta


def _vmem_specs(n):
    return [pl.BlockSpec(memory_space=pltpu.MemorySpace.VMEM) for _ in range(n)]


def _gine_layer(h, gather_b, scatter_b, eattr, w1, b1, w2, b2, gamma, beta):
    """One GINEConv (eps=0, msg=ReLU(x_j + e), nn=Lin-ReLU-Lin) followed by BatchNorm."""
    bf16 = jnp.bfloat16
    xj = jnp.dot(gather_b, h.astype(bf16),
                 preferred_element_type=jnp.float32)                 # x[edge_index[0]]
    msg = jnp.maximum(xj + eattr, 0.0)                               # ReLU(x_j + edge_attr)
    aggr = jnp.dot(scatter_b, msg.astype(bf16),
                   preferred_element_type=jnp.float32)               # sum at edge_index[1]
    z = h + aggr                                                     # (1 + eps) * x, eps = 0
    z = jnp.maximum(
        jnp.dot(z.astype(bf16), w1, preferred_element_type=jnp.float32) + b1, 0.0)
    z = jnp.dot(z.astype(bf16), w2, preferred_element_type=jnp.float32) + b2
    return _bn(z, gamma, beta)


# ---------------------------------------------------------------- kernel ----

def _graph_model_kernel(xf_ref, pe_ref, src_ref, dst_ref, ea_ref,
                        g_pe_ref, b_pe_ref, g_x_ref, b_x_ref,
                        w_pel_ref, b_pel_ref, g_pl_ref, b_pl_ref,
                        wxa_ref, wxb_ref, b_xl_ref, g_a_ref, b_a_ref,
                        edge_emb_ref,
                        w1s_ref, b1s_ref, w2s_ref, b2s_ref, gs_ref, bs_ref,
                        w_head_ref, b_head_ref,
                        o_ref):
    bf16 = jnp.bfloat16
    n = xf_ref.shape[0]
    e = src_ref.shape[0]
    num_layers = w1s_ref.shape[0]
    out_dim = w_head_ref.shape[1] // 2

    # ------------------------------------------------------- preprocess ----
    pe_n = _bn(pe_ref[...], g_pe_ref[...], b_pe_ref[...])            # pe_norm
    xf_n = _bn(xf_ref[...], g_x_ref[...], b_x_ref[...])              # node_emb_norm
    pel = jnp.dot(pe_n.astype(bf16), w_pel_ref[...],
                  preferred_element_type=jnp.float32) + b_pel_ref[...]  # pe_lin
    pel_n = _bn(pel, g_pl_ref[...], b_pl_ref[...])                   # pe_lin_norm
    # x_linear(concat(xf_n, pel_n)) == xf_n @ Wa + pel_n @ Wb + b (split weight)
    h = (jnp.dot(xf_n.astype(bf16), wxa_ref[...], preferred_element_type=jnp.float32)
         + jnp.dot(pel_n.astype(bf16), wxb_ref[...], preferred_element_type=jnp.float32)
         + b_xl_ref[...])
    h = _bn(h, g_a_ref[...], b_a_ref[...])                           # node_emb_norm_after

    # -------------------- build one-hot gather/scatter + edge features ----
    # Only E indices cross HBM; the dense 0/1 operands live purely in VMEM and are
    # built directly in bf16 (exact for 0/1, half the VMEM, native bf16 MXU path).
    iota_en = jax.lax.broadcasted_iota(jnp.int32, (e, n), 1)         # (E, N)
    gather_b = (src_ref[...] == iota_en).astype(bf16)                # x_j row selector
    iota_ne = jax.lax.broadcasted_iota(jnp.int32, (n, e), 0)         # (N, E)
    scatter_b = (dst_ref[...] == iota_ne).astype(bf16)               # sum-to-target selector
    # edge_emb(edge_attr) for a 2-entry embedding: exact 0/1 row selection.
    sel = (ea_ref[...] >= 0.5).astype(jnp.float32)                   # (E, 1)
    e0 = edge_emb_ref[0:1, :]
    e1 = edge_emb_ref[1:2, :]
    eattr = e0 + sel * (e1 - e0)                                     # (E, C)

    # ---------------------------------------------------- GINE layers -----
    if num_layers <= 4:
        # Short fixed trip-count: static unroll is fine and gives LLO full visibility.
        for i in range(num_layers):
            h = _gine_layer(h, gather_b, scatter_b, eattr,
                            w1s_ref[i], b1s_ref[i], w2s_ref[i], b2s_ref[i],
                            gs_ref[i], bs_ref[i])
    else:
        # Deep configs: bound live ranges / instruction stream with a real loop.
        def body(i, hcur):
            return _gine_layer(hcur, gather_b, scatter_b, eattr,
                               w1s_ref[i], b1s_ref[i], w2s_ref[i], b2s_ref[i],
                               gs_ref[i], bs_ref[i])
        h = jax.lax.fori_loop(0, num_layers, body, h)

    # ------------------------------ fused heads: one (C, 2*out_dim) matmul -
    hz = jnp.dot(h.astype(bf16), w_head_ref[...],
                 preferred_element_type=jnp.float32) + b_head_ref[...]   # (N, 128)
    mu = jax.nn.sigmoid(hz)
    # Guarded exp-1 keeps the discarded branch overflow-free (ELU, alpha=1).
    s = jnp.where(hz > 0, hz, jnp.exp(jnp.minimum(hz, 0.0)) - 1.0)
    s = s + 1.0 + 1e-14
    lane = jax.lax.broadcasted_iota(jnp.int32, hz.shape, 1)
    o_ref[...] = jnp.where(lane < out_dim, mu, s)                    # [mu | sigma], lane-dense


# --------------------------------------------------------------- wrapper ----

def _estimate_vmem_limit(n, e, c, d_flat, walk, pe_dim, num_layers, out_dim):
    """Rough VMEM footprint (bytes) of inputs + params + in-kernel temporaries."""
    f32, bf16, i32 = 4, 2, 4
    io = ((n * d_flat + n * walk) * f32 + e * i32 * 2 + e * f32
          + n * 2 * out_dim * f32)
    params = ((walk + d_flat + pe_dim + 2 * c) * 2 * f32             # BN gammas/betas
              + walk * pe_dim * bf16 + pe_dim * f32                  # pe_lin
              + (d_flat + pe_dim) * c * bf16 + c * f32               # x_linear
              + 2 * c * f32                                          # edge_emb
              + num_layers * (2 * c * c * bf16 + 4 * c * f32)        # GINE nns + BNs
              + c * 2 * out_dim * bf16 + 2 * out_dim * f32)          # fused head
    temps = (2 * n * e * (i32 + bf16)                                # iotas + bf16 masks
             + 8 * n * c * f32 + 4 * e * c * f32)                    # h/z/aggr/msg temps
    est = 2 * (io + params + temps)                                  # headroom for scratch
    # Clamp to 64 MiB so the same limit is safe on v7x (64 MiB physical VMEM).
    # TODO(synk): on v5e/v6e (128 MiB) this could be raised toward ~100 MiB when
    #             batching graphs or scaling E*N before resorting to tiling.
    return int(min(max(est, 32 * 1024 * 1024), 64 * 1024 * 1024))


def graph_model_forward(params, x, pe, edge_index, edge_attr, batch):
    """GraphModel.forward (model_type='gine', dropout=0.0).  `batch` is only
    consumed by the 'mamba' branch and is accepted for signature fidelity."""
    del batch
    # TODO(synk): model_type == 'mamba' (MambaConv with Mamba-SSM self-attention,
    # to_dense_batch / permute_within_batch) has no clean Pallas equivalent here;
    # only the fully-specified 'gine' path is implemented.
    n = x.shape[0]
    e = edge_index.shape[1]
    xf = x.reshape(n, -1).astype(jnp.float32)                        # x.view(x.size(0), -1)
    src_col = edge_index[0].astype(jnp.int32).reshape(-1, 1)         # (E, 1)
    dst_row = edge_index[1].astype(jnp.int32).reshape(1, -1)         # (1, E)
    ea_col = edge_attr.astype(jnp.float32).reshape(-1, 1)            # (E, 1)

    bf16 = jnp.bfloat16
    c = params['w_head'].shape[0]
    out_dim = params['w_head'].shape[1] // 2
    d_flat = xf.shape[1]
    walk = pe.shape[1]
    pe_dim = params['w_pel'].shape[1]
    num_layers = params['w1s'].shape[0]

    args = (xf, pe.astype(jnp.float32), src_col, dst_row, ea_col,
            params['g_pe'], params['b_pe'], params['g_x'], params['b_x'],
            params['w_pel'].astype(bf16), params['b_pel'],
            params['g_pl'], params['b_pl'],
            params['wx_a'].astype(bf16), params['wx_b'].astype(bf16), params['b_xl'],
            params['g_after'], params['b_after'],
            params['edge_emb'],
            params['w1s'].astype(bf16), params['b1s'],
            params['w2s'].astype(bf16), params['b2s'],
            params['gammas'], params['betas'],
            params['w_head'].astype(bf16), params['b_head'])

    vmem_limit = _estimate_vmem_limit(n, e, c, d_flat, walk, pe_dim, num_layers, out_dim)

    out = pl.pallas_call(
        _graph_model_kernel,
        out_shape=jax.ShapeDtypeStruct((n, 2 * out_dim), jnp.float32),
        in_specs=_vmem_specs(len(args)),
        out_specs=pl.BlockSpec(memory_space=pltpu.MemorySpace.VMEM),
        compiler_params=pltpu.CompilerParams(vmem_limit_bytes=vmem_limit),
    )(*args)

    return out[:, :out_dim], out[:, out_dim:]


# ------------------------------------------------------------- parameters ---

def init_params(key, *, channels, pe_dim, walk_length, window_size_emd,
                lookback, num_layers, out_dim=64):
    d_flat = (lookback + 1) * window_size_emd
    process_dim = pe_dim + d_flat
    keys = jax.random.split(key, 5 + 2 * num_layers)

    def lin(k, fan_in, fan_out):
        bound = 1.0 / float(fan_in) ** 0.5
        kw, kb = jax.random.split(k)
        w = jax.random.uniform(kw, (fan_in, fan_out), jnp.float32, -bound, bound)
        b = jax.random.uniform(kb, (1, fan_out), jnp.float32, -bound, bound)
        return w, b

    p = {}
    p['g_pe'] = jnp.ones((1, walk_length), jnp.float32)
    p['b_pe'] = jnp.zeros((1, walk_length), jnp.float32)
    p['g_x'] = jnp.ones((1, d_flat), jnp.float32)
    p['b_x'] = jnp.zeros((1, d_flat), jnp.float32)
    p['w_pel'], p['b_pel'] = lin(keys[0], walk_length, pe_dim)
    p['g_pl'] = jnp.ones((1, pe_dim), jnp.float32)
    p['b_pl'] = jnp.zeros((1, pe_dim), jnp.float32)
    wx, bx = lin(keys[1], process_dim, channels)
    p['wx_a'], p['wx_b'], p['b_xl'] = wx[:d_flat], wx[d_flat:], bx
    p['g_after'] = jnp.ones((1, channels), jnp.float32)
    p['b_after'] = jnp.zeros((1, channels), jnp.float32)
    p['edge_emb'] = jax.random.normal(keys[2], (2, channels), jnp.float32)

    w1s, b1s, w2s, b2s = [], [], [], []
    for i in range(num_layers):
        w1, b1 = lin(keys[3 + 2 * i], channels, channels)
        w2, b2 = lin(keys[4 + 2 * i], channels, channels)
        w1s.append(w1); b1s.append(b1); w2s.append(w2); b2s.append(b2)
    p['w1s'] = jnp.stack(w1s)                       # (L, C, C)
    p['b1s'] = jnp.stack(b1s)                       # (L, 1, C)
    p['w2s'] = jnp.stack(w2s)
    p['b2s'] = jnp.stack(b2s)
    p['gammas'] = jnp.ones((num_layers, 1, channels), jnp.float32)
    p['betas'] = jnp.zeros((num_layers, 1, channels), jnp.float32)

    w_mu, b_mu = lin(keys[3 + 2 * num_layers], channels, out_dim)
    w_sig, b_sig = lin(keys[4 + 2 * num_layers], channels, out_dim)
    p['w_head'] = jnp.concatenate([w_mu, w_sig], axis=1)    # (C, 2*out_dim) — lane-dense
    p['b_head'] = jnp.concatenate([b_mu, b_sig], axis=1)    # (1, 2*out_dim)
    return p


# ------------------------------------------------------------------ main ----

if __name__ == "__main__":
    channels, pe_dim, num_layers = 32, 8, 2
    window_size_emd, walk_length, lookback = 4, 8, 2
    N, E = 16, 32

    key = jax.random.PRNGKey(0)
    k_x, k_pe, k_src, k_dst, k_ea, k_params = jax.random.split(key, 6)

    x = jax.random.normal(k_x, (N, lookback + 1, window_size_emd), jnp.float32)
    pe = jax.random.normal(k_pe, (N, walk_length), jnp.float32)
    edge_index = jnp.stack([jax.random.randint(k_src, (E,), 0, N),
                            jax.random.randint(k_dst, (E,), 0, N)]).astype(jnp.int32)
    edge_attr = jax.random.randint(k_ea, (E,), 0, 2).astype(jnp.int32)
    batch = jnp.concatenate([jnp.zeros(N // 2, jnp.int32),
                             jnp.ones(N - N // 2, jnp.int32)])

    params = init_params(k_params, channels=channels, pe_dim=pe_dim,
                         walk_length=walk_length, window_size_emd=window_size_emd,
                         lookback=lookback, num_layers=num_layers)

    fwd = jax.jit(graph_model_forward)
    mu, sigma = fwd(params, x, pe, edge_index, edge_attr, batch)
    jax.block_until_ready((mu, sigma))
    assert mu.shape == (N, 64) and sigma.shape == (N, 64)
    assert bool(jnp.all(jnp.isfinite(mu))) and bool(jnp.all(jnp.isfinite(sigma)))
    assert bool(jnp.all(mu >= 0.0)) and bool(jnp.all(mu <= 1.0))
    assert bool(jnp.all(sigma > 0.0))
    print("KERNEL_OK")
</pallas_src>

<mosaic_0001>
module attributes {stable_mosaic.version = 11 : i64} {
  func.func @_graph_model_kernel(%arg0: memref<16x12xf32, #tpu.memory_space<vmem>>, %arg1: memref<16x8xf32, #tpu.memory_space<vmem>>, %arg2: memref<32x1xi32, #tpu.memory_space<vmem>>, %arg3: memref<1x32xi32, #tpu.memory_space<vmem>>, %arg4: memref<32x1xf32, #tpu.memory_space<vmem>>, %arg5: memref<1x8xf32, #tpu.memory_space<vmem>>, %arg6: memref<1x8xf32, #tpu.memory_space<vmem>>, %arg7: memref<1x12xf32, #tpu.memory_space<vmem>>, %arg8: memref<1x12xf32, #tpu.memory_space<vmem>>, %arg9: memref<8x8xbf16, #tpu.memory_space<vmem>>, %arg10: memref<1x8xf32, #tpu.memory_space<vmem>>, %arg11: memref<1x8xf32, #tpu.memory_space<vmem>>, %arg12: memref<1x8xf32, #tpu.memory_space<vmem>>, %arg13: memref<12x32xbf16, #tpu.memory_space<vmem>>, %arg14: memref<8x32xbf16, #tpu.memory_space<vmem>>, %arg15: memref<1x32xf32, #tpu.memory_space<vmem>>, %arg16: memref<1x32xf32, #tpu.memory_space<vmem>>, %arg17: memref<1x32xf32, #tpu.memory_space<vmem>>, %arg18: memref<2x32xf32, #tpu.memory_space<vmem>>, %arg19: memref<2x32x32xbf16, #tpu.memory_space<vmem>>, %arg20: memref<2x1x32xf32, #tpu.memory_space<vmem>>, %arg21: memref<2x32x32xbf16, #tpu.memory_space<vmem>>, %arg22: memref<2x1x32xf32, #tpu.memory_space<vmem>>, %arg23: memref<2x1x32xf32, #tpu.memory_space<vmem>>, %arg24: memref<2x1x32xf32, #tpu.memory_space<vmem>>, %arg25: memref<32x128xbf16, #tpu.memory_space<vmem>>, %arg26: memref<1x128xf32, #tpu.memory_space<vmem>>, %arg27: memref<16x128xf32, #tpu.memory_space<vmem>>) attributes {dimension_semantics = [], scalar_prefetch = 0 : i64, scratch_operands = 0 : i64, tpu.core_type = #tpu.core_type<tc>} {
    %c0 = arith.constant 0 : index
    %c0_0 = arith.constant 0 : index
    %0 = vector.load %arg1[%c0, %c0_0] : memref<16x8xf32, #tpu.memory_space<vmem>>, vector<16x8xf32>
    %c0_1 = arith.constant 0 : index
    %c0_2 = arith.constant 0 : index
    %1 = vector.load %arg5[%c0_1, %c0_2] : memref<1x8xf32, #tpu.memory_space<vmem>>, vector<1x8xf32>
    %c0_3 = arith.constant 0 : index
    %c0_4 = arith.constant 0 : index
    %2 = vector.load %arg6[%c0_3, %c0_4] : memref<1x8xf32, #tpu.memory_space<vmem>>, vector<1x8xf32>
    %cst = arith.constant dense<0.000000e+00> : vector<8xf32>
    %3 = vector.multi_reduction <add>, %0, %cst [0] : vector<16x8xf32> to vector<8xf32>
    %4 = vector.shape_cast %3 : vector<8xf32> to vector<1x8xf32>
    %cst_5 = arith.constant 6.250000e-02 : f32
    %5 = vector.broadcast %cst_5 : f32 to vector<1x8xf32>
    %6 = arith.mulf %4, %5 : vector<1x8xf32>
    %7 = vector.broadcast %6 : vector<1x8xf32> to vector<16x8xf32>
    %8 = arith.subf %0, %7 : vector<16x8xf32>
    %9 = arith.mulf %8, %8 : vector<16x8xf32>
    %cst_6 = arith.constant dense<0.000000e+00> : vector<8xf32>
    %10 = vector.multi_reduction <add>, %9, %cst_6 [0] : vector<16x8xf32> to vector<8xf32>
    %11 = vector.shape_cast %10 : vector<8xf32> to vector<1x8xf32>
    %cst_7 = arith.constant 6.250000e-02 : f32
    %12 = vector.broadcast %cst_7 : f32 to vector<1x8xf32>
    %13 = arith.mulf %11, %12 : vector<1x8xf32>
    %cst_8 = arith.constant 9.99999974E-6 : f32
    %14 = vector.broadcast %cst_8 : f32 to vector<1x8xf32>
    %15 = arith.addf %13, %14 : vector<1x8xf32>
    %16 = math.rsqrt %15 : vector<1x8xf32>
    %17 = arith.mulf %1, %16 : vector<1x8xf32>
    %18 = vector.broadcast %17 : vector<1x8xf32> to vector<16x8xf32>
    %19 = arith.mulf %8, %18 : vector<16x8xf32>
    %20 = vector.broadcast %2 : vector<1x8xf32> to vector<16x8xf32>
    %21 = arith.addf %19, %20 : vector<16x8xf32>
    %c0_9 = arith.constant 0 : index
    %c0_10 = arith.constant 0 : index
    %22 = vector.load %arg0[%c0_9, %c0_10] : memref<16x12xf32, #tpu.memory_space<vmem>>, vector<16x12xf32>
    %c0_11 = arith.constant 0 : index
    %c0_12 = arith.constant 0 : index
    %23 = vector.load %arg7[%c0_11, %c0_12] : memref<1x12xf32, #tpu.memory_space<vmem>>, vector<1x12xf32>
    %c0_13 = arith.constant 0 : index
    %c0_14 = arith.constant 0 : index
    %24 = vector.load %arg8[%c0_13, %c0_14] : memref<1x12xf32, #tpu.memory_space<vmem>>, vector<1x12xf32>
    %cst_15 = arith.constant dense<0.000000e+00> : vector<12xf32>
    %25 = vector.multi_reduction <add>, %22, %cst_15 [0] : vector<16x12xf32> to vector<12xf32>
    %26 = vector.shape_cast %25 : vector<12xf32> to vector<1x12xf32>
    %cst_16 = arith.constant 6.250000e-02 : f32
    %27 = vector.broadcast %cst_16 : f32 to vector<1x12xf32>
    %28 = arith.mulf %26, %27 : vector<1x12xf32>
    %29 = vector.broadcast %28 : vector<1x12xf32> to vector<16x12xf32>
    %30 = arith.subf %22, %29 : vector<16x12xf32>
    %31 = arith.mulf %30, %30 : vector<16x12xf32>
    %cst_17 = arith.constant dense<0.000000e+00> : vector<12xf32>
    %32 = vector.multi_reduction <add>, %31, %cst_17 [0] : vector<16x12xf32> to vector<12xf32>
    %33 = vector.shape_cast %32 : vector<12xf32> to vector<1x12xf32>
    %cst_18 = arith.constant 6.250000e-02 : f32
    %34 = vector.broadcast %cst_18 : f32 to vector<1x12xf32>
    %35 = arith.mulf %33, %34 : vector<1x12xf32>
    %cst_19 = arith.constant 9.99999974E-6 : f32
    %36 = vector.broadcast %cst_19 : f32 to vector<1x12xf32>
    %37 = arith.addf %35, %36 : vector<1x12xf32>
    %38 = math.rsqrt %37 : vector<1x12xf32>
    %39 = arith.mulf %23, %38 : vector<1x12xf32>
    %40 = vector.broadcast %39 : vector<1x12xf32> to vector<16x12xf32>
    %41 = arith.mulf %30, %40 : vector<16x12xf32>
    %42 = vector.broadcast %24 : vector<1x12xf32> to vector<16x12xf32>
    %43 = arith.addf %41, %42 : vector<16x12xf32>
    %44 = arith.truncf %21 : vector<16x8xf32> to vector<16x8xbf16>
    %c0_20 = arith.constant 0 : index
    %c0_21 = arith.constant 0 : index
    %45 = vector.load %arg9[%c0_20, %c0_21] : memref<8x8xbf16, #tpu.memory_space<vmem>>, vector<8x8xbf16>
    %cst_22 = arith.constant dense<0.000000e+00> : vector<16x8xf32>
    %46 = tpu.matmul %44, %45, %cst_22 {dimension_numbers = #tpu.dot_dimension_numbers<[1], [0], [0], [1], [0, 0, 1, 1], [], []>} : vector<16x8xbf16>, vector<8x8xbf16>, vector<16x8xf32> -> vector<16x8xf32>
    %c0_23 = arith.constant 0 : index
    %c0_24 = arith.constant 0 : index
    %47 = vector.load %arg10[%c0_23, %c0_24] : memref<1x8xf32, #tpu.memory_space<vmem>>, vector<1x8xf32>
    %48 = vector.broadcast %47 : vector<1x8xf32> to vector<16x8xf32>
    %49 = arith.addf %46, %48 : vector<16x8xf32>
    %c0_25 = arith.constant 0 : index
    %c0_26 = arith.constant 0 : index
    %50 = vector.load %arg11[%c0_25, %c0_26] : memref<1x8xf32, #tpu.memory_space<vmem>>, vector<1x8xf32>
    %c0_27 = arith.constant 0 : index
    %c0_28 = arith.constant 0 : index
    %51 = vector.load %arg12[%c0_27, %c0_28] : memref<1x8xf32, #tpu.memory_space<vmem>>, vector<1x8xf32>
    %cst_29 = arith.constant dense<0.000000e+00> : vector<8xf32>
    %52 = vector.multi_reduction <add>, %49, %cst_29 [0] : vector<16x8xf32> to vector<8xf32>
    %53 = vector.shape_cast %52 : vector<8xf32> to vector<1x8xf32>
    %cst_30 = arith.constant 6.250000e-02 : f32
    %54 = vector.broadcast %cst_30 : f32 to vector<1x8xf32>
    %55 = arith.mulf %53, %54 : vector<1x8xf32>
    %56 = vector.broadcast %55 : vector<1x8xf32> to vector<16x8xf32>
    %57 = arith.subf %49, %56 : vector<16x8xf32>
    %58 = arith.mulf %57, %57 : vector<16x8xf32>
    %cst_31 = arith.constant dense<0.000000e+00> : vector<8xf32>
    %59 = vector.multi_reduction <add>, %58, %cst_31 [0] : vector<16x8xf32> to vector<8xf32>
    %60 = vector.shape_cast %59 : vector<8xf32> to vector<1x8xf32>
    %cst_32 = arith.constant 6.250000e-02 : f32
    %61 = vector.broadcast %cst_32 : f32 to vector<1x8xf32>
    %62 = arith.mulf %60, %61 : vector<1x8xf32>
    %cst_33 = arith.constant 9.99999974E-6 : f32
    %63 = vector.broadcast %cst_33 : f32 to vector<1x8xf32>
    %64 = arith.addf %62, %63 : vector<1x8xf32>
    %65 = math.rsqrt %64 : vector<1x8xf32>
    %66 = arith.mulf %50, %65 : vector<1x8xf32>
    %67 = vector.broadcast %66 : vector<1x8xf32> to vector<16x8xf32>
    %68 = arith.mulf %57, %67 : vector<16x8xf32>
    %69 = vector.broadcast %51 : vector<1x8xf32> to vector<16x8xf32>
    %70 = arith.addf %68, %69 : vector<16x8xf32>
    %71 = arith.truncf %43 : vector<16x12xf32> to vector<16x12xbf16>
    %c0_34 = arith.constant 0 : index
    %c0_35 = arith.constant 0 : index
    %72 = vector.load %arg13[%c0_34, %c0_35] : memref<12x32xbf16, #tpu.memory_space<vmem>>, vector<12x32xbf16>
    %cst_36 = arith.constant dense<0.000000e+00> : vector<16x32xf32>
    %73 = tpu.matmul %71, %72, %cst_36 {dimension_numbers = #tpu.dot_dimension_numbers<[1], [0], [0], [1], [0, 0, 1, 1], [], []>} : vector<16x12xbf16>, vector<12x32xbf16>, vector<16x32xf32> -> vector<16x32xf32>
    %74 = arith.truncf %70 : vector<16x8xf32> to vector<16x8xbf16>
    %c0_37 = arith.constant 0 : index
    %c0_38 = arith.constant 0 : index
    %75 = vector.load %arg14[%c0_37, %c0_38] : memref<8x32xbf16, #tpu.memory_space<vmem>>, vector<8x32xbf16>
    %cst_39 = arith.constant dense<0.000000e+00> : vector<16x32xf32>
    %76 = tpu.matmul %74, %75, %cst_39 {dimension_numbers = #tpu.dot_dimension_numbers<[1], [0], [0], [1], [0, 0, 1, 1], [], []>} : vector<16x8xbf16>, vector<8x32xbf16>, vector<16x32xf32> -> vector<16x32xf32>
    %77 = arith.addf %73, %76 : vector<16x32xf32>
    %c0_40 = arith.constant 0 : index
    %c0_41 = arith.constant 0 : index
    %78 = vector.load %arg15[%c0_40, %c0_41] : memref<1x32xf32, #tpu.memory_space<vmem>>, vector<1x32xf32>
    %79 = vector.broadcast %78 : vector<1x32xf32> to vector<16x32xf32>
    %80 = arith.addf %77, %79 : vector<16x32xf32>
    %c0_42 = arith.constant 0 : index
    %c0_43 = arith.constant 0 : index
    %81 = vector.load %arg16[%c0_42, %c0_43] : memref<1x32xf32, #tpu.memory_space<vmem>>, vector<1x32xf32>
    %c0_44 = arith.constant 0 : index
    %c0_45 = arith.constant 0 : index
    %82 = vector.load %arg17[%c0_44, %c0_45] : memref<1x32xf32, #tpu.memory_space<vmem>>, vector<1x32xf32>
    %cst_46 = arith.constant dense<0.000000e+00> : vector<32xf32>
    %83 = vector.multi_reduction <add>, %80, %cst_46 [0] : vector<16x32xf32> to vector<32xf32>
    %84 = vector.shape_cast %83 : vector<32xf32> to vector<1x32xf32>
    %cst_47 = arith.constant 6.250000e-02 : f32
    %85 = vector.broadcast %cst_47 : f32 to vector<1x32xf32>
    %86 = arith.mulf %84, %85 : vector<1x32xf32>
    %87 = vector.broadcast %86 : vector<1x32xf32> to vector<16x32xf32>
    %88 = arith.subf %80, %87 : vector<16x32xf32>
    %89 = arith.mulf %88, %88 : vector<16x32xf32>
    %cst_48 = arith.constant dense<0.000000e+00> : vector<32xf32>
    %90 = vector.multi_reduction <add>, %89, %cst_48 [0] : vector<16x32xf32> to vector<32xf32>
    %91 = vector.shape_cast %90 : vector<32xf32> to vector<1x32xf32>
    %cst_49 = arith.constant 6.250000e-02 : f32
    %92 = vector.broadcast %cst_49 : f32 to vector<1x32xf32>
    %93 = arith.mulf %91, %92 : vector<1x32xf32>
    %cst_50 = arith.constant 9.99999974E-6 : f32
    %94 = vector.broadcast %cst_50 : f32 to vector<1x32xf32>
    %95 = arith.addf %93, %94 : vector<1x32xf32>
    %96 = math.rsqrt %95 : vector<1x32xf32>
    %97 = arith.mulf %81, %96 : vector<1x32xf32>
    %98 = vector.broadcast %97 : vector<1x32xf32> to vector<16x32xf32>
    %99 = arith.mulf %88, %98 : vector<16x32xf32>
    %100 = vector.broadcast %82 : vector<1x32xf32> to vector<16x32xf32>
    %101 = arith.addf %99, %100 : vector<16x32xf32>
    %102 = tpu.iota {dimensions = array<i32: 1>} : vector<32x16xi32>
    %c0_51 = arith.constant 0 : index
    %c0_52 = arith.constant 0 : index
    %103 = vector.load %arg2[%c0_51, %c0_52] : memref<32x1xi32, #tpu.memory_space<vmem>>, vector<32x1xi32>
    %104 = vector.broadcast %103 : vector<32x1xi32> to vector<32x16xi32>
    %105 = arith.cmpi eq, %104, %102 : vector<32x16xi32>
    %106 = arith.extui %105 : vector<32x16xi1> to vector<32x16xi32>
    %107 = arith.sitofp %106 : vector<32x16xi32> to vector<32x16xf32>
    %108 = arith.truncf %107 : vector<32x16xf32> to vector<32x16xbf16>
    %109 = tpu.iota {dimensions = array<i32: 0>} : vector<16x32xi32>
    %c0_53 = arith.constant 0 : index
    %c0_54 = arith.constant 0 : index
    %110 = vector.load %arg3[%c0_53, %c0_54] : memref<1x32xi32, #tpu.memory_space<vmem>>, vector<1x32xi32>
    %111 = vector.broadcast %110 : vector<1x32xi32> to vector<16x32xi32>
    %112 = arith.cmpi eq, %111, %109 : vector<16x32xi32>
    %113 = arith.extui %112 : vector<16x32xi1> to vector<16x32xi32>
    %114 = arith.sitofp %113 : vector<16x32xi32> to vector<16x32xf32>
    %115 = arith.truncf %114 : vector<16x32xf32> to vector<16x32xbf16>
    %c0_55 = arith.constant 0 : index
    %c0_56 = arith.constant 0 : index
    %116 = vector.load %arg4[%c0_55, %c0_56] : memref<32x1xf32, #tpu.memory_space<vmem>>, vector<32x1xf32>
    %cst_57 = arith.constant 5.000000e-01 : f32
    %117 = vector.broadcast %cst_57 : f32 to vector<32x1xf32>
    %118 = arith.cmpf oge, %116, %117 : vector<32x1xf32>
    %119 = arith.extui %118 : vector<32x1xi1> to vector<32x1xi32>
    %120 = arith.sitofp %119 : vector<32x1xi32> to vector<32x1xf32>
    %c0_58 = arith.constant 0 : index
    %c0_59 = arith.constant 0 : index
    %121 = vector.load %arg18[%c0_58, %c0_59] : memref<2x32xf32, #tpu.memory_space<vmem>>, vector<1x32xf32>
    %c1 = arith.constant 1 : index
    %c0_60 = arith.constant 0 : index
    %122 = vector.load %arg18[%c1, %c0_60] : memref<2x32xf32, #tpu.memory_space<vmem>>, vector<1x32xf32>
    %123 = arith.subf %122, %121 : vector<1x32xf32>
    %124 = vector.broadcast %120 : vector<32x1xf32> to vector<32x32xf32>
    %125 = vector.broadcast %123 : vector<1x32xf32> to vector<32x32xf32>
    %126 = arith.mulf %124, %125 : vector<32x32xf32>
    %127 = vector.broadcast %121 : vector<1x32xf32> to vector<32x32xf32>
    %128 = arith.addf %127, %126 : vector<32x32xf32>
    %c0_61 = arith.constant 0 : index
    %c0_62 = arith.constant 0 : index
    %c0_63 = arith.constant 0 : index
    %129 = vector.load %arg19[%c0_61, %c0_62, %c0_63] : memref<2x32x32xbf16, #tpu.memory_space<vmem>>, vector<1x32x32xbf16>
    %130 = vector.shape_cast %129 : vector<1x32x32xbf16> to vector<32x32xbf16>
    %c0_64 = arith.constant 0 : index
    %c0_65 = arith.constant 0 : index
    %c0_66 = arith.constant 0 : index
    %131 = vector.load %arg20[%c0_64, %c0_65, %c0_66] : memref<2x1x32xf32, #tpu.memory_space<vmem>>, vector<1x1x32xf32>
    %132 = vector.shape_cast %131 : vector<1x1x32xf32> to vector<1x32xf32>
    %c0_67 = arith.constant 0 : index
    %c0_68 = arith.constant 0 : index
    %c0_69 = arith.constant 0 : index
    %133 = vector.load %arg21[%c0_67, %c0_68, %c0_69] : memref<2x32x32xbf16, #tpu.memory_space<vmem>>, vector<1x32x32xbf16>
    %134 = vector.shape_cast %133 : vector<1x32x32xbf16> to vector<32x32xbf16>
    %c0_70 = arith.constant 0 : index
    %c0_71 = arith.constant 0 : index
    %c0_72 = arith.constant 0 : index
    %135 = vector.load %arg22[%c0_70, %c0_71, %c0_72] : memref<2x1x32xf32, #tpu.memory_space<vmem>>, vector<1x1x32xf32>
    %136 = vector.shape_cast %135 : vector<1x1x32xf32> to vector<1x32xf32>
    %c0_73 = arith.constant 0 : index
    %c0_74 = arith.constant 0 : index
    %c0_75 = arith.constant 0 : index
    %137 = vector.load %arg23[%c0_73, %c0_74, %c0_75] : memref<2x1x32xf32, #tpu.memory_space<vmem>>, vector<1x1x32xf32>
    %138 = vector.shape_cast %137 : vector<1x1x32xf32> to vector<1x32xf32>
    %c0_76 = arith.constant 0 : index
    %c0_77 = arith.constant 0 : index
    %c0_78 = arith.constant 0 : index
    %139 = vector.load %arg24[%c0_76, %c0_77, %c0_78] : memref<2x1x32xf32, #tpu.memory_space<vmem>>, vector<1x1x32xf32>
    %140 = vector.shape_cast %139 : vector<1x1x32xf32> to vector<1x32xf32>
    %141 = arith.truncf %101 : vector<16x32xf32> to vector<16x32xbf16>
    %cst_79 = arith.constant dense<0.000000e+00> : vector<32x32xf32>
    %142 = tpu.matmul %108, %141, %cst_79 {dimension_numbers = #tpu.dot_dimension_numbers<[1], [0], [0], [1], [0, 0, 1, 1], [], []>} : vector<32x16xbf16>, vector<16x32xbf16>, vector<32x32xf32> -> vector<32x32xf32>
    %143 = arith.addf %142, %128 : vector<32x32xf32>
    %cst_80 = arith.constant 0.000000e+00 : f32
    %144 = vector.broadcast %cst_80 : f32 to vector<32x32xf32>
    %145 = arith.maximumf %143, %144 : vector<32x32xf32>
    %146 = arith.truncf %145 : vector<32x32xf32> to vector<32x32xbf16>
    %cst_81 = arith.constant dense<0.000000e+00> : vector<16x32xf32>
    %147 = tpu.matmul %115, %146, %cst_81 {dimension_numbers = #tpu.dot_dimension_numbers<[1], [0], [0], [1], [0, 0, 1, 1], [], []>} : vector<16x32xbf16>, vector<32x32xbf16>, vector<16x32xf32> -> vector<16x32xf32>
    %148 = arith.addf %101, %147 : vector<16x32xf32>
    %149 = arith.truncf %148 : vector<16x32xf32> to vector<16x32xbf16>
    %cst_82 = arith.constant dense<0.000000e+00> : vector<16x32xf32>
    %150 = tpu.matmul %149, %130, %cst_82 {dimension_numbers = #tpu.dot_dimension_numbers<[1], [0], [0], [1], [0, 0, 1, 1], [], []>} : vector<16x32xbf16>, vector<32x32xbf16>, vector<16x32xf32> -> vector<16x32xf32>
    %151 = vector.broadcast %132 : vector<1x32xf32> to vector<16x32xf32>
    %152 = arith.addf %150, %151 : vector<16x32xf32>
    %cst_83 = arith.constant 0.000000e+00 : f32
    %153 = vector.broadcast %cst_83 : f32 to vector<16x32xf32>
    %154 = arith.maximumf %152, %153 : vector<16x32xf32>
    %155 = arith.truncf %154 : vector<16x32xf32> to vector<16x32xbf16>
    %cst_84 = arith.constant dense<0.000000e+00> : vector<16x32xf32>
    %156 = tpu.matmul %155, %134, %cst_84 {dimension_numbers = #tpu.dot_dimension_numbers<[1], [0], [0], [1], [0, 0, 1, 1], [], []>} : vector<16x32xbf16>, vector<32x32xbf16>, vector<16x32xf32> -> vector<16x32xf32>
    %157 = vector.broadcast %136 : vector<1x32xf32> to vector<16x32xf32>
    %158 = arith.addf %156, %157 : vector<16x32xf32>
    %cst_85 = arith.constant dense<0.000000e+00> : vector<32xf32>
    %159 = vector.multi_reduction <add>, %158, %cst_85 [0] : vector<16x32xf32> to vector<32xf32>
    %160 = vector.shape_cast %159 : vector<32xf32> to vector<1x32xf32>
    %cst_86 = arith.constant 6.250000e-02 : f32
    %161 = vector.broadcast %cst_86 : f32 to vector<1x32xf32>
    %162 = arith.mulf %160, %161 : vector<1x32xf32>
    %163 = vector.broadcast %162 : vector<1x32xf32> to vector<16x32xf32>
    %164 = arith.subf %158, %163 : vector<16x32xf32>
    %165 = arith.mulf %164, %164 : vector<16x32xf32>
    %cst_87 = arith.constant dense<0.000000e+00> : vector<32xf32>
    %166 = vector.multi_reduction <add>, %165, %cst_87 [0] : vector<16x32xf32> to vector<32xf32>
    %167 = vector.shape_cast %166 : vector<32xf32> to vector<1x32xf32>
    %cst_88 = arith.constant 6.250000e-02 : f32
    %168 = vector.broadcast %cst_88 : f32 to vector<1x32xf32>
    %169 = arith.mulf %167, %168 : vector<1x32xf32>
    %cst_89 = arith.constant 9.99999974E-6 : f32
    %170 = vector.broadcast %cst_89 : f32 to vector<1x32xf32>
    %171 = arith.addf %169, %170 : vector<1x32xf32>
    %172 = math.rsqrt %171 : vector<1x32xf32>
    %173 = arith.mulf %138, %172 : vector<1x32xf32>
    %174 = vector.broadcast %173 : vector<1x32xf32> to vector<16x32xf32>
    %175 = arith.mulf %164, %174 : vector<16x32xf32>
    %176 = vector.broadcast %140 : vector<1x32xf32> to vector<16x32xf32>
    %177 = arith.addf %175, %176 : vector<16x32xf32>
    %c1_90 = arith.constant 1 : index
    %c0_91 = arith.constant 0 : index
    %c0_92 = arith.constant 0 : index
    %178 = vector.load %arg19[%c1_90, %c0_91, %c0_92] : memref<2x32x32xbf16, #tpu.memory_space<vmem>>, vector<1x32x32xbf16>
    %179 = vector.shape_cast %178 : vector<1x32x32xbf16> to vector<32x32xbf16>
    %c1_93 = arith.constant 1 : index
    %c0_94 = arith.constant 0 : index
    %c0_95 = arith.constant 0 : index
    %180 = vector.load %arg20[%c1_93, %c0_94, %c0_95] : memref<2x1x32xf32, #tpu.memory_space<vmem>>, vector<1x1x32xf32>
    %181 = vector.shape_cast %180 : vector<1x1x32xf32> to vector<1x32xf32>
    %c1_96 = arith.constant 1 : index
    %c0_97 = arith.constant 0 : index
    %c0_98 = arith.constant 0 : index
    %182 = vector.load %arg21[%c1_96, %c0_97, %c0_98] : memref<2x32x32xbf16, #tpu.memory_space<vmem>>, vector<1x32x32xbf16>
    %183 = vector.shape_cast %182 : vector<1x32x32xbf16> to vector<32x32xbf16>
    %c1_99 = arith.constant 1 : index
    %c0_100 = arith.constant 0 : index
    %c0_101 = arith.constant 0 : index
    %184 = vector.load %arg22[%c1_99, %c0_100, %c0_101] : memref<2x1x32xf32, #tpu.memory_space<vmem>>, vector<1x1x32xf32>
    %185 = vector.shape_cast %184 : vector<1x1x32xf32> to vector<1x32xf32>
    %c1_102 = arith.constant 1 : index
    %c0_103 = arith.constant 0 : index
    %c0_104 = arith.constant 0 : index
    %186 = vector.load %arg23[%c1_102, %c0_103, %c0_104] : memref<2x1x32xf32, #tpu.memory_space<vmem>>, vector<1x1x32xf32>
    %187 = vector.shape_cast %186 : vector<1x1x32xf32> to vector<1x32xf32>
    %c1_105 = arith.constant 1 : index
    %c0_106 = arith.constant 0 : index
    %c0_107 = arith.constant 0 : index
    %188 = vector.load %arg24[%c1_105, %c0_106, %c0_107] : memref<2x1x32xf32, #tpu.memory_space<vmem>>, vector<1x1x32xf32>
    %189 = vector.shape_cast %188 : vector<1x1x32xf32> to vector<1x32xf32>
    %190 = arith.truncf %177 : vector<16x32xf32> to vector<16x32xbf16>
    %cst_108 = arith.constant dense<0.000000e+00> : vector<32x32xf32>
    %191 = tpu.matmul %108, %190, %cst_108 {dimension_numbers = #tpu.dot_dimension_numbers<[1], [0], [0], [1], [0, 0, 1, 1], [], []>} : vector<32x16xbf16>, vector<16x32xbf16>, vector<32x32xf32> -> vector<32x32xf32>
    %192 = arith.addf %191, %128 : vector<32x32xf32>
    %cst_109 = arith.constant 0.000000e+00 : f32
    %193 = vector.broadcast %cst_109 : f32 to vector<32x32xf32>
    %194 = arith.maximumf %192, %193 : vector<32x32xf32>
    %195 = arith.truncf %194 : vector<32x32xf32> to vector<32x32xbf16>
    %cst_110 = arith.constant dense<0.000000e+00> : vector<16x32xf32>
    %196 = tpu.matmul %115, %195, %cst_110 {dimension_numbers = #tpu.dot_dimension_numbers<[1], [0], [0], [1], [0, 0, 1, 1], [], []>} : vector<16x32xbf16>, vector<32x32xbf16>, vector<16x32xf32> -> vector<16x32xf32>
    %197 = arith.addf %177, %196 : vector<16x32xf32>
    %198 = arith.truncf %197 : vector<16x32xf32> to vector<16x32xbf16>
    %cst_111 = arith.constant dense<0.000000e+00> : vector<16x32xf32>
    %199 = tpu.matmul %198, %179, %cst_111 {dimension_numbers = #tpu.dot_dimension_numbers<[1], [0], [0], [1], [0, 0, 1, 1], [], []>} : vector<16x32xbf16>, vector<32x32xbf16>, vector<16x32xf32> -> vector<16x32xf32>
    %200 = vector.broadcast %181 : vector<1x32xf32> to vector<16x32xf32>
    %201 = arith.addf %199, %200 : vector<16x32xf32>
    %cst_112 = arith.constant 0.000000e+00 : f32
    %202 = vector.broadcast %cst_112 : f32 to vector<16x32xf32>
    %203 = arith.maximumf %201, %202 : vector<16x32xf32>
    %204 = arith.truncf %203 : vector<16x32xf32> to vector<16x32xbf16>
    %cst_113 = arith.constant dense<0.000000e+00> : vector<16x32xf32>
    %205 = tpu.matmul %204, %183, %cst_113 {dimension_numbers = #tpu.dot_dimension_numbers<[1], [0], [0], [1], [0, 0, 1, 1], [], []>} : vector<16x32xbf16>, vector<32x32xbf16>, vector<16x32xf32> -> vector<16x32xf32>
    %206 = vector.broadcast %185 : vector<1x32xf32> to vector<16x32xf32>
    %207 = arith.addf %205, %206 : vector<16x32xf32>
    %cst_114 = arith.constant dense<0.000000e+00> : vector<32xf32>
    %208 = vector.multi_reduction <add>, %207, %cst_114 [0] : vector<16x32xf32> to vector<32xf32>
    %209 = vector.shape_cast %208 : vector<32xf32> to vector<1x32xf32>
    %cst_115 = arith.constant 6.250000e-02 : f32
    %210 = vector.broadcast %cst_115 : f32 to vector<1x32xf32>
    %211 = arith.mulf %209, %210 : vector<1x32xf32>
    %212 = vector.broadcast %211 : vector<1x32xf32> to vector<16x32xf32>
    %213 = arith.subf %207, %212 : vector<16x32xf32>
    %214 = arith.mulf %213, %213 : vector<16x32xf32>
    %cst_116 = arith.constant dense<0.000000e+00> : vector<32xf32>
    %215 = vector.multi_reduction <add>, %214, %cst_116 [0] : vector<16x32xf32> to vector<32xf32>
    %216 = vector.shape_cast %215 : vector<32xf32> to vector<1x32xf32>
    %cst_117 = arith.constant 6.250000e-02 : f32
    %217 = vector.broadcast %cst_117 : f32 to vector<1x32xf32>
    %218 = arith.mulf %216, %217 : vector<1x32xf32>
    %cst_118 = arith.constant 9.99999974E-6 : f32
    %219 = vector.broadcast %cst_118 : f32 to vector<1x32xf32>
    %220 = arith.addf %218, %219 : vector<1x32xf32>
    %221 = math.rsqrt %220 : vector<1x32xf32>
    %222 = arith.mulf %187, %221 : vector<1x32xf32>
    %223 = vector.broadcast %222 : vector<1x32xf32> to vector<16x32xf32>
    %224 = arith.mulf %213, %223 : vector<16x32xf32>
    %225 = vector.broadcast %189 : vector<1x32xf32> to vector<16x32xf32>
    %226 = arith.addf %224, %225 : vector<16x32xf32>
    %227 = arith.truncf %226 : vector<16x32xf32> to vector<16x32xbf16>
    %c0_119 = arith.constant 0 : index
    %c0_120 = arith.constant 0 : index
    %228 = vector.load %arg25[%c0_119, %c0_120] : memref<32x128xbf16, #tpu.memory_space<vmem>>, vector<32x128xbf16>
    %cst_121 = arith.constant dense<0.000000e+00> : vector<16x128xf32>
    %229 = tpu.matmul %227, %228, %cst_121 {dimension_numbers = #tpu.dot_dimension_numbers<[1], [0], [0], [1], [0, 0, 1, 1], [], []>} : vector<16x32xbf16>, vector<32x128xbf16>, vector<16x128xf32> -> vector<16x128xf32>
    %c0_122 = arith.constant 0 : index
    %c0_123 = arith.constant 0 : index
    %230 = vector.load %arg26[%c0_122, %c0_123] : memref<1x128xf32, #tpu.memory_space<vmem>>, vector<1x128xf32>
    %231 = vector.broadcast %230 : vector<1x128xf32> to vector<16x128xf32>
    %232 = arith.addf %229, %231 : vector<16x128xf32>
    %233 = arith.negf %232 : vector<16x128xf32>
    %234 = math.exp %233 : vector<16x128xf32>
    %cst_124 = arith.constant 1.000000e+00 : f32
    %235 = vector.broadcast %cst_124 : f32 to vector<16x128xf32>
    %236 = arith.addf %235, %234 : vector<16x128xf32>
    %237 = arith.divf %235, %236 : vector<16x128xf32>
    %cst_125 = arith.constant 0.000000e+00 : f32
    %238 = vector.broadcast %cst_125 : f32 to vector<16x128xf32>
    %239 = arith.cmpf ogt, %232, %238 : vector<16x128xf32>
    %cst_126 = arith.constant 0.000000e+00 : f32
    %240 = vector.broadcast %cst_126 : f32 to vector<16x128xf32>
    %241 = arith.minimumf %232, %240 : vector<16x128xf32>
    %242 = math.exp %241 : vector<16x128xf32>
    %cst_127 = arith.constant 1.000000e+00 : f32
    %243 = vector.broadcast %cst_127 : f32 to vector<16x128xf32>
    %244 = arith.subf %242, %243 : vector<16x128xf32>
    %245 = arith.select %239, %232, %244 : vector<16x128xi1>, vector<16x128xf32>
    %cst_128 = arith.constant 1.000000e+00 : f32
    %246 = vector.broadcast %cst_128 : f32 to vector<16x128xf32>
    %247 = arith.addf %245, %246 : vector<16x128xf32>
    %cst_129 = arith.constant 9.99999982E-15 : f32
    %248 = vector.broadcast %cst_129 : f32 to vector<16x128xf32>
    %249 = arith.addf %247, %248 : vector<16x128xf32>
    %250 = tpu.iota {dimensions = array<i32: 1>} : vector<16x128xi32>
    %c64_i32 = arith.constant 64 : i32
    %251 = vector.broadcast %c64_i32 : i32 to vector<16x128xi32>
    %252 = arith.cmpi slt, %250, %251 : vector<16x128xi32>
    %253 = arith.select %252, %237, %249 : vector<16x128xi1>, vector<16x128xf32>
    %c0_130 = arith.constant 0 : index
    %c0_131 = arith.constant 0 : index
    %254 = vector.load %arg27[%c0_130, %c0_131] : memref<16x128xf32, #tpu.memory_space<vmem>>, vector<16x128xf32>
    tpu.vector_store %arg27[%c0_130, %c0_131], %253 {strides = array<i32>} : memref<16x128xf32, #tpu.memory_space<vmem>>, vector<16x128xf32>,
    return
  }
}

</mosaic_0001>

<bundles_post_ra>
// kernel: graph_model_forward.1
= control target key start
LH: loop header
LB: loop body
LE: loop exit
PB: predicated region body
PF: predicated region fallthrough
CT: control target
= control target key end

     0   :  { %vm198_vm0 = vcmask 1043456   ;;  %vm91_vm1 = vcmask 64512   ;;  %vm142_vm5 = vcmask 97280   ;;  %vm297_vm9 = vcmask 1045504   ;;  %s1459_s9 = inlined_call_operand.vmem [shape: bf16[8,8], index: 9, kind: input, shape index: {}]   ;;  %s1460_s1 = inlined_call_operand.vmem [shape: f32[16,8], index: 1, kind: input, shape index: {}]   ;;  %s1461_s6 = inlined_call_operand.vmem [shape: f32[1,8], index: 6, kind: input, shape index: {}]   ;;  %s1462_s10 = inlined_call_operand.vmem [shape: f32[1,8], index: 10, kind: input, shape index: {}]   ;;  %s1463_s5 = inlined_call_operand.vmem [shape: f32[1,8], index: 5, kind: input, shape index: {}]   ;;  %s1464_s8 = inlined_call_operand.vmem [shape: f32[1,12], index: 8, kind: input, shape index: {}]   ;;  %s1465_s12 = inlined_call_operand.vmem [shape: f32[1,8], index: 12, kind: input, shape index: {}]   ;;  %s1466_s0 = inlined_call_operand.vmem [shape: f32[16,12], index: 0, kind: input, shape index: {}]   ;;  %s1467_s7 = inlined_call_operand.vmem [shape: f32[1,12], index: 7, kind: input, shape index: {}]   ;;  %s1468_s13 = inlined_call_operand.vmem [shape: bf16[12,32], index: 13, kind: input, shape index: {}]   ;;  %s1469_s15 = inlined_call_operand.vmem [shape: f32[1,32], index: 15, kind: input, shape index: {}]   ;;  %s1470_s14 = inlined_call_operand.vmem [shape: bf16[8,32], index: 14, kind: input, shape index: {}]   ;;  %s1471_s2 = inlined_call_operand.vmem [shape: s32[32,1], index: 2, kind: input, shape index: {}]   ;;  %s1472_s11 = inlined_call_operand.vmem [shape: f32[1,8], index: 11, kind: input, shape index: {}]   ;;  %s1473_s17 = inlined_call_operand.vmem [shape: f32[1,32], index: 17, kind: input, shape index: {}]   ;;  %s1474_s16 = inlined_call_operand.vmem [shape: f32[1,32], index: 16, kind: input, shape index: {}]   ;;  %s1475_s4 = inlined_call_operand.vmem [shape: f32[32,1], index: 4, kind: input, shape index: {}]   ;;  %s1476_s3 = inlined_call_operand.vmem [shape: s32[1,32], index: 3, kind: input, shape index: {}]   ;;  %s1477_s18 = inlined_call_operand.vmem [shape: f32[2,32], index: 18, kind: input, shape index: {}]   ;;  %s1478_s20 = inlined_call_operand.vmem [shape: f32[2,1,32], index: 20, kind: input, shape index: {}]   ;;  %s1479_s19 = inlined_call_operand.vmem [shape: bf16[2,32,32], index: 19, kind: input, shape index: {}]   ;;  %s1480_s22 = inlined_call_operand.vmem [shape: f32[2,1,32], index: 22, kind: input, shape index: {}]   ;;  %s1481_s21 = inlined_call_operand.vmem [shape: bf16[2,32,32], index: 21, kind: input, shape index: {}]   ;;  %s1482_s24 = inlined_call_operand.vmem [shape: f32[2,1,32], index: 24, kind: input, shape index: {}]   ;;  %s1483_s23 = inlined_call_operand.vmem [shape: f32[2,1,32], index: 23, kind: input, shape index: {}]   ;;  %s1484_s26 = inlined_call_operand.vmem [shape: f32[1,128], index: 26, kind: input, shape index: {}]   ;;  %s1485_s25 = inlined_call_operand.vmem [shape: bf16[32,128], index: 25, kind: input, shape index: {}]   ;;  %s1486_s27 = inlined_call_operand.vmem [shape: f32[16,128], index: 27, kind: output, shape index: {}]  }
   0x1   :  { %1490 = sst [smem:[#allocation2_spill]] %s1459_s9  ;;  %vm323_vm13 = vcmask 261120  }
   0x2   :  { %1491 = sst [smem:[#allocation3_spill]] %s1460_s1 }
   0x3   :  { %1492 = sst [smem:[#allocation4_spill]] %s1461_s6 }
   0x4   :  { %1493 = sst [smem:[#allocation5_spill]] %s1462_s10 }
   0x5   :  { %1494 = sst [smem:[#allocation6_spill]] %s1463_s5 }
   0x6   :  { %1495 = sst [smem:[#allocation7_spill]] %s1464_s8 }
   0x7   :  { %1496 = sst [smem:[#allocation8_spill]] %s1465_s12 }
   0x8   :  { %1497 = sst [smem:[#allocation9_spill]] %s1466_s0 }
   0x9   :  { %1498 = sst [smem:[#allocation10_spill]] %s1467_s7 }
   0xa   :  { %1499 = sst [smem:[#allocation11_spill]] %s1468_s13 }
   0xb   :  { %1500 = sst [smem:[#allocation12_spill]] %s1469_s15 }
   0xc   :  { %1501 = sst [smem:[#allocation13_spill]] %s1470_s14 }
   0xd   :  { %s1502_s7 = sld [smem:[#allocation2_spill]] }
   0xe   :  { %s1503_s8 = sld [smem:[#allocation3_spill]] }
   0xf   :  { %s1504_s9 = sld [smem:[#allocation6_spill]] }
  0x10   :  { %s1505_s0 = sld [smem:[#allocation4_spill]] }
  0x11   :  { %s1506_s6 = sld [smem:[#allocation9_spill]] }
  0x12   :  { %s1507_s28 = sld [smem:[#allocation5_spill]] }
  0x13   :  { %v190_v0 = vld [vmem:[%s1502_s7] sm:$0xf]  ;;  %s1508_s29 = sld [smem:[#allocation10_spill]] }
  0x14   :  { %v87_v1 = vld [vmem:[%s1503_s8] sm:$0xff]  ;;  %v88_v2 = vld [vmem:[%s1503_s8 + $0x8] sm:$0xff]  ;;  %v200_v3 = vsel %vm198_vm0, %v190_v0, 0  ;;  %s1509_s14 = sld [smem:[#allocation11_spill]] }
  0x15   :  { %v92_v4 = vsel %vm91_vm1, %v87_v1, 0.0  ;;  %209 = vmatpush.bf16.msra.mxu0 %v200_v3  ;;  %v93_v5 = vsel %vm91_vm1, %v88_v2, 0.0  ;;  %v89_v34 = vld [vmem:[%s1504_s9] sm:$0x1]  ;;  %s1510_s7 = sld [smem:[#allocation7_spill]] }
  0x16   :  { %v94_v6 = vadd.f32 %v93_v5, %v92_v4  ;;  %v1026_v39 = vld [vmem:[%s1505_s0] ss:$0 sm:$0xff]  ;;  %s1511_s8 = sld [smem:[#allocation13_spill]] }
  0x17   :  { %v138_v45 = vld [vmem:[%s1506_s6] sm:$0xff]  ;;  %v139_v46 = vld [vmem:[%s1506_s6 + $0x8] sm:$0xff]  ;;  %s1513_s13 = sld [smem:[#allocation12_spill]] }
  0x18   :  { %v95_v7 = vrot.slane %v94_v6, 4  ;;  %v143_v47 = vsel %vm142_vm5, %v138_v45, 0.0  ;;  %v144_v48 = vsel %vm142_vm5, %v139_v46, 0.0 }
  0x19   :  { %v145_v49 = vadd.f32 %v144_v48, %v143_v47 }
  0x1a   :  { %v96_v8 = vadd.f32 %v95_v7, %v94_v6 }
  0x1b   :  { %v146_v50 = vrot.slane %v145_v49, 4 }
  0x1c   :  { %v97_v9 = vrot.slane %v96_v8, 2 }
  0x1d   :  { %v147_v51 = vadd.f32 %v146_v50, %v145_v49 }
  0x1e   :  { %v98_v10 = vadd.f32 %v97_v9, %v96_v8  ;;  %v1027_v8 = vld [vmem:[%s1507_s28] ss:$0 sm:$0xff] }
  0x1f   :  { %v148_v52 = vrot.slane %v147_v51, 2 }
  0x20   :  { %v99_v11 = vrot.slane %v98_v10, 1 }
  0x21   :  { %v149_v53 = vadd.f32 %v148_v52, %v147_v51 }
  0x22   :  { %v100_v12 = vadd.f32 %v99_v11, %v98_v10 }
  0x23   :  { %v150_v54 = vrot.slane %v149_v53, 1 }
  0x24   :  { %v101_v13 = vmul.f32 0.0625, %v100_v12 }
  0x25   :  { %v151_v55 = vadd.f32 %v150_v54, %v149_v53  ;;  %v268_v54 = vld [vmem:[%s1511_s8] sm:$0xf] }
  0x26   :  { %v102_v14 = vsub.f32 %v87_v1, %v101_v13  ;;  %v103_v15 = vsub.f32 %v88_v2, %v101_v13 }
  0x27   :  { %v152_v56 = vmul.f32 0.0625, %v151_v55  ;;  %v273_v55 = vsel %vm198_vm0, %v268_v54, 0 }
  0x28   :  { %v104_v16 = vmul.f32 %v102_v14, %v102_v14  ;;  %v105_v17 = vmul.f32 %v103_v15, %v103_v15  ;;  %282 = vmatpush.bf16.msra.mxu1 %v273_v55 }
  0x29   :  { %v153_v57 = vsub.f32 %v138_v45, %v152_v56  ;;  %v154_v58 = vsub.f32 %v139_v46, %v152_v56 }
  0x2a   :  { %v106_v18 = vsel %vm91_vm1, %v104_v16, 0.0  ;;  %v107_v19 = vsel %vm91_vm1, %v105_v17, 0.0 }
  0x2b   :  { %v108_v20 = vadd.f32 %v107_v19, %v106_v18  ;;  %v155_v59 = vmul.f32 %v153_v57, %v153_v57  ;;  %v156_v60 = vmul.f32 %v154_v58, %v154_v58 }
  0x2d   :  { %v109_v21 = vrot.slane %v108_v20, 4  ;;  %v157_v61 = vsel %vm142_vm5, %v155_v59, 0.0  ;;  %v158_v62 = vsel %vm142_vm5, %v156_v60, 0.0  ;;  %v372_v59 = vld [vmem:[%s1471_s2] sm:$0xff]  ;;  %v374_v60 = vld [vmem:[%s1471_s2 + $0x10] sm:$0xff] }
  0x2e   :  { %v159_v63 = vadd.f32 %v158_v62, %v157_v61  ;;  %v1065_v61 = vmov 0  }
  0x2f   :  { %v110_v22 = vadd.f32 %v109_v21, %v108_v20  ;;  %1013 = vset.pattern.permute.xlu0 %v1065_v61  ;;  %1014 = vset.pattern.permute.xlu1 %v1065_v61 }
  0x30   :  { %v160_v0 = vrot.slane %v159_v63, 4  ;;  %377 = vperm.xlu0 %1013, %v372_v59   ;;  %383 = vperm.xlu1 %1014, %v374_v60   ;;  %v416_v60 = vld [vmem:[%s1475_s4 + $0x10] sm:$0xff] }
  0x31   :  { %v111_v23 = vrot.slane %v110_v22, 2  ;;  %1015 = vset.pattern.permute.xlu2 %v1065_v61  ;;  %v417_v61 = vld [vmem:[%s1475_s4 + $0x18] sm:$0xff] }
  0x32   :  { %v161_v1 = vadd.f32 %v160_v0, %v159_v63  ;;  %v373_v63 = vld [vmem:[%s1471_s2 + $0x8] sm:$0xff]  ;;  %v375_v0 = vld [vmem:[%s1471_s2 + $0x18] sm:$0xff] }
  0x33   :  { %v112_v24 = vadd.f32 %v111_v23, %v110_v22 }
  0x34   :  { %v162_v2 = vrot.slane %v161_v1, 2 }
  0x35   :  { %v113_v25 = vrot.slane %v112_v24, 1 }
  0x36   :  { %v163_v3 = vadd.f32 %v162_v2, %v161_v1 }
  0x37   :  { %v114_v26 = vadd.f32 %v113_v25, %v112_v24 }
  0x38   :  { %v164_v4 = vrot.slane %v163_v3, 1  ;;  %380 = vperm.xlu0 %1013, %v373_v63   ;;  %386 = vperm.xlu1 %1014, %v375_v0   ;;  %v415_v63 = vld [vmem:[%s1475_s4 + $0x8] sm:$0xff] }
  0x39   :  { %v115_v27 = vmul.f32 0.0625, %v114_v26 }
  0x3a   :  { %v165_v5 = vadd.f32 %v164_v4, %v163_v3 }
  0x3b   :  { %v116_v28 = vadd.f32 1e-05, %v115_v27  ;;  %v140_v27 = vld [vmem:[%s1508_s29] sm:$0x1] }
  0x3c   :  { %v166_v7 = vmul.f32 0.0625, %v165_v5 }
  0x3d   :  { %1041 = vrsqrt.f32 %v116_v28  ;;  %vm123_vm2 = vweird.f32 %v116_v28 }
  0x3e   :  { %v167_v9 = vadd.f32 1e-05, %v166_v7 }
  0x40   :  { %1043 = vrsqrt.f32 %v167_v9  ;;  %vm174_vm6 = vweird.f32 %v167_v9 }
  0x43   :  { %v1042_v29 = vpop.eup %1041 }
  0x44   :  { %v118_v30 = vmul.f32 %v1042_v29, %v116_v28  ;;  %vm124_vm3 = vweird.f32 %v1042_v29 }
  0x45   :  { %vm125_vm4 = vmor %vm123_vm2, %vm124_vm3  ;;  %vm421_vm2 = vcmp.ge.f32.partialorder %v417_v61, 0.5 }
  0x46   :  { %v119_v31 = vmul.f32 %v1042_v29, %v118_v30  ;;  %v1044_v13 = vpop.eup %1043 }
  0x47   :  { %v169_v17 = vmul.f32 %v1044_v13, %v167_v9  ;;  %vm175_vm7 = vweird.f32 %v1044_v13 }
  0x48   :  { %v120_v32 = vmul.f32 0.5, %v119_v31  ;;  %vm176_vm8 = vmor %vm174_vm6, %vm175_vm7  ;;  %vm476_vm7 = vcmask 130048  }
  0x49   :  { %v170_v19 = vmul.f32 %v1044_v13, %v169_v17 }
  0x4a   :  { %v121_v33 = vsub.f32 1.5, %v120_v32 }
  0x4b   :  { %v171_v21 = vmul.f32 0.5, %v170_v19 }
  0x4c   :  { %v122_v35 = vmul.f32 %v1042_v29, %v121_v33  ;;  %v920_v33 = vld [vmem:[%s1509_s14] sm:$0xf] }
  0x4d   :  { %v172_v23 = vsub.f32 1.5, %v171_v21 }
  0x4e   :  { %v126_v36 = vsel %vm125_vm4, %v1042_v29, %v122_v35  ;;  %vm419_vm4 = vcmp.ge.f32.partialorder %v415_v63, 0.5 }
  0x4f   :  { %v127_v37 = vmul.f32 %v126_v36, %v89_v34  ;;  %v173_v25 = vmul.f32 %v1044_v13, %v172_v23  ;;  %v1000_v34 = vld [vmem:[%s1509_s14] sm:$0x30] }
  0x50   :  { %v921_v35 = vor.u32 %v1000_v34, %v920_v33 }
  0x51   :  { %v129_v38 = vperm.slane %v127_v37, 0  ;;  %v177_v28 = vsel %vm176_vm8, %v1044_v13, %v173_v25 }
  0x52   :  { %v178_v29 = vmul.f32 %v177_v28, %v140_v27 }
  0x53   :  { %v131_v40 = vmul.f32 %v129_v38, %v102_v14  ;;  %v132_v41 = vmul.f32 %v129_v38, %v103_v15  ;;  %v1028_v38 = vld [vmem:[%s1510_s7] ss:$0 sm:$0xff]  ;;  %s1512_s7 = sld [smem:[#allocation8_spill]] }
  0x54   :  { %v180_v31 = vperm.slane %v178_v29, 0 }
  0x55   :  { %v136_v42 = vadd.f32 %v1026_v39, %v131_v40  ;;  %v137_v43 = vadd.f32 %v1026_v39, %v132_v41  ;;  %v299_v41 = vsel %vm297_vm9, %v921_v35, 0 }
  0x56   :  { %v182_v36 = vmul.f32 %v180_v31, %v153_v57  ;;  %v183_v37 = vmul.f32 %v180_v31, %v154_v58  ;;  %308 = vmatpush.bf16.msra.mxu2 %v299_v41 }
  0x57   :  { %v189_v44 = vpack.c.bf16 %v137_v43, %v136_v42 }
  0x58   :  { %v187_v42 = vadd.f32 %v1028_v38, %v182_v36  ;;  %v188_v43 = vadd.f32 %v1028_v38, %v183_v37 }
  0x59   :  { %916 = vmatmul.msk.bf16.vlgmr.msra.gmra.mxu0 %vm91_vm1, %v189_v44 }
  0x5a   :  { %v264_v46 = vpack.c.bf16 %v188_v43, %v187_v42 }
  0x5c   :  { %922 = vmatmul.msk.bf16.vlgmr.msra.gmra.mxu2 %vm142_vm5, %v264_v46 }
  0xa2   :  { %v378_v54 = vpop.permute.xlu0 %377 }
  0xd6   :  { %v211_v6 = vpop.f32.mrf.mxu0 }
  0xd7   :  { %v212_v10 = vadd.f32 %v1027_v8, %v211_v6  ;;  %v216_v6 = vld [vmem:[%s1472_s11] sm:$0x1] }
  0xd9   :  { %v218_v14 = vsel %vm91_vm1, %v212_v10, 0.0 }
  0xde   :  { %v213_v11 = vpop.f32.mrf.mxu0 }
  0xdf   :  { %v214_v12 = vadd.f32 %v1027_v8, %v213_v11  ;;  %v1029_v11 = vld [vmem:[%s1512_s7] ss:$0 sm:$0xff]  ;;  %v310_v17 = vpop.f32.mrf.mxu2 }
  0xe1   :  { %v219_v15 = vsel %vm91_vm1, %v214_v12, 0.0 }
  0xe2   :  { %v220_v16 = vadd.f32 %v219_v15, %v218_v14 }
  0xe4   :  { %v221_v18 = vrot.slane %v220_v16, 4 }
  0xe6   :  { %v222_v20 = vadd.f32 %v221_v18, %v220_v16 }
  0xe7   :  { %v312_v21 = vpop.f32.mrf.mxu2 }
  0xe8   :  { %v223_v22 = vrot.slane %v222_v20, 2 }
  0xea   :  { %v224_v24 = vadd.f32 %v223_v22, %v222_v20  ;;  %v1030_v20 = vld [vmem:[%s1513_s13] ss:$0 sm:$0xff] }
  0xec   :  { %v225_v26 = vrot.slane %v224_v24, 1 }
  0xee   :  { %v226_v30 = vadd.f32 %v225_v26, %v224_v24 }
  0xf0   :  { %v227_v32 = vmul.f32 0.0625, %v226_v30 }
  0xf2   :  { %v228_v39 = vsub.f32 %v212_v10, %v227_v32  ;;  %v229_v40 = vsub.f32 %v214_v12, %v227_v32 }
  0xf4   :  { %v230_v44 = vmul.f32 %v228_v39, %v228_v39  ;;  %v231_v45 = vmul.f32 %v229_v40, %v229_v40 }
  0xf6   :  { %v232_v47 = vsel %vm91_vm1, %v230_v44, 0.0  ;;  %v233_v48 = vsel %vm91_vm1, %v231_v45, 0.0 }
  0xf7   :  { %v234_v49 = vadd.f32 %v233_v48, %v232_v47 }
  0xf9   :  { %v235_v50 = vrot.slane %v234_v49, 4 }
  0xfb   :  { %v236_v51 = vadd.f32 %v235_v50, %v234_v49 }
  0xfd   :  { %v237_v52 = vrot.slane %v236_v51, 2 }
  0xff   :  { %v238_v53 = vadd.f32 %v237_v52, %v236_v51 }
 0x101   :  { %v239_v56 = vrot.slane %v238_v53, 1 }
 0x103   :  { %v240_v57 = vadd.f32 %v239_v56, %v238_v53 }
 0x105   :  { %v241_v58 = vmul.f32 0.0625, %v240_v57  ;;  %v321_v57 = vld [vmem:[%s1474_s16] sm:$0x1] }
 0x107   :  { %v242_v62 = vadd.f32 1e-05, %v241_v58  ;;  %v370_v58 = vlaneseq }
 0x109   :  { %1045 = vrsqrt.f32 %v242_v62  ;;  %vm249_vm11 = vweird.f32 %v242_v62 }
 0x10f   :  { %v1046_v1 = vpop.eup %1045 }
 0x110   :  { %v244_v2 = vmul.f32 %v1046_v1, %v242_v62  ;;  %vm250_vm10 = vweird.f32 %v1046_v1  ;;  %v414_v62 = vld [vmem:[%s1475_s4] sm:$0xff] }
 0x111   :  { %vm251_vm12 = vmor %vm249_vm11, %vm250_vm10  ;;  %vm418_vm3 = vcmp.ge.f32.partialorder %v414_v62, 0.5 }
 0x112   :  { %v245_v3 = vmul.f32 %v1046_v1, %v244_v2 }
 0x114   :  { %v246_v4 = vmul.f32 0.5, %v245_v3 }
 0x116   :  { %v247_v5 = vsub.f32 1.5, %v246_v4 }
 0x118   :  { %v248_v7 = vmul.f32 %v1046_v1, %v247_v5 }
 0x11a   :  { %v252_v8 = vsel %vm251_vm12, %v1046_v1, %v248_v7  ;;  %v1066_v1 = vmov 0.0   ;;  %v381_v7 = vpop.permute.xlu0 %380 }
 0x11b   :  { %v253_v9 = vmul.f32 %v252_v8, %v216_v6  ;;  %v932_v3 = vsel %vm421_vm2, 1.0, %v1066_v1  ;;  %v1306_v6 = vand.u32 127, %v370_v58 }
 0x11d   :  { %v255_v10 = vperm.slane %v253_v9, 0  ;;  %v1031_v9 = vld [vmem:[%s1473_s17] ss:$0 sm:$0xff]  ;;  %vm388_vm5 = vcmp.eq.s32.totalorder %v378_v54, %v1306_v6  ;;  %vm389_vm6 = vcmp.eq.s32.totalorder %v381_v7, %v1306_v6 }
 0x11f   :  { %v258_v12 = vmul.f32 %v255_v10, %v229_v40  ;;  %v257_v13 = vmul.f32 %v255_v10, %v228_v39  ;;  %v929_v10 = vsel %vm418_vm3, 1.0, %v1066_v1 }
 0x121   :  { %v262_v14 = vadd.f32 %v1029_v11, %v257_v13  ;;  %v263_v15 = vadd.f32 %v1029_v11, %v258_v12  ;;  %v930_v11 = vsel %vm419_vm4, 1.0, %v1066_v1 }
 0x123   :  { %v267_v16 = vpack.c.bf16 %v263_v15, %v262_v14 }
 0x125   :  { %917 = vmatmul.msk.bf16.vlgmr.msra.gmra.mxu1 %vm91_vm1, %v267_v16  ;;  %vm420_vm1 = vcmp.ge.f32.partialorder %v416_v60, 0.5  ;;  %v1021_v16 = vpack.i.bf16 %v930_v11, %v929_v10  ;;  %v1003_v10 = vld [vmem:[%s1481_s21] sm:$0xff] }
 0x126   :  { %v931_v2 = vsel %vm420_vm1, 1.0, %v1066_v1 }
 0x127   :  { %v1016_v5 = vpack.i.bf16 %v932_v3, %v931_v2  ;;  %v1002_v2 = vld [vmem:[%s1479_s19 + $0x8] sm:$0xff]  ;;  %v1001_v3 = vld [vmem:[%s1479_s19] sm:$0xff] }
 0x128   :  { %552 = vmatpush.bf16.msrb.mxu1 %v1002_v2 }
 0x129   :  { %1017 = vperm.xlu2 %1015, %v1016_v5  }
 0x12c   :  { %553 = vmatpush.bf16.msrb.mxu1 %v1001_v3  ;;  %v1036_v3 = vld [vmem:[%s1482_s24] ss:$0 sm:$0xff] }
 0x131   :  { %1022 = vperm.xlu2 %1015, %v1021_v16  }
 0x1a2   :  { %v284_v18 = vpop.f32.mrf.mxu1 }
 0x1a3   :  { %v311_v19 = vadd.f32 %v310_v17, %v284_v18  ;;  %v923_v17 = vsel %vm388_vm5, 1.0, %v1066_v1  ;;  %v924_v18 = vsel %vm389_vm6, 1.0, %v1066_v1  ;;  %vm907_vm6 = vcmp.lt.s32.totalorder %v1306_v6, 64 }
 0x1a5   :  { %v319_v23 = vadd.f32 %v1030_v20, %v311_v19  ;;  %v384_v19 = vpop.permute.xlu1 %383 }
 0x1a6   :  { %vm390_vm8 = vcmp.eq.s32.totalorder %v384_v19, %v1306_v6 }
 0x1a7   :  { %v324_v26 = vsel %vm323_vm13, %v319_v23, 0.0 }
 0x1aa   :  { %v286_v22 = vpop.f32.mrf.mxu1 }
 0x1ab   :  { %v313_v24 = vadd.f32 %v312_v21, %v286_v22  ;;  %v1323_v21 = vpack.c.bf16 %v924_v18, %v923_v17 }
 0x1ad   :  { %v320_v25 = vadd.f32 %v1030_v20, %v313_v24  ;;  %v387_v22 = vpop.permute.xlu1 %386 }
 0x1ae   :  { %vm391_vm9 = vcmp.eq.s32.totalorder %v387_v22, %v1306_v6 }
 0x1af   :  { %v325_v27 = vsel %vm323_vm13, %v320_v25, 0.0  ;;  %v926_v24 = vsel %vm391_vm9, 1.0, %v1066_v1 }
 0x1b0   :  { %v326_v28 = vadd.f32 %v325_v27, %v324_v26  ;;  %v1018_v27 = vpop.permute.xlu2 %1017 }
 0x1b2   :  { %v327_v29 = vrot.slane %v326_v28, 4 }
 0x1b4   :  { %v328_v30 = vadd.f32 %v327_v29, %v326_v28  ;;  %v430_v28 = vld [vmem:[%s1477_s18] sm:$0x1]  ;;  %v431_v29 = vld [vmem:[%s1477_s18 + $0x1] sm:$0x1] }
 0x1b6   :  { %v329_v31 = vrot.slane %v328_v30, 2 }
 0x1b8   :  { %v330_v32 = vadd.f32 %v329_v31, %v328_v30  ;;  %v432_v31 = vsub.f32 %v431_v29, %v430_v28 }
 0x1ba   :  { %v331_v33 = vrot.slane %v330_v32, 1 }
 0x1bc   :  { %v332_v34 = vadd.f32 %v331_v33, %v330_v32  ;;  %v1019_v32 = vunpack.i.l.bf16 %v1018_v27  ;;  %v1023_v33 = vpop.permute.xlu2 %1022 }
 0x1be   :  { %v333_v35 = vmul.f32 0.0625, %v332_v34  ;;  %v453_v34 = vperm.slane %v432_v31, 0 }
 0x1c0   :  { %v335_v36 = vsub.f32 %v320_v25, %v333_v35  ;;  %v334_v37 = vsub.f32 %v319_v23, %v333_v35  ;;  %v925_v23 = vsel %vm390_vm8, 1.0, %v1066_v1  ;;  %v1025_v35 = vunpack.i.h.bf16 %v1023_v33 }
 0x1c1   :  { %v1331_v25 = vpack.c.bf16 %v926_v24, %v925_v23 }
 0x1c2   :  { %v337_v38 = vmul.f32 %v335_v36, %v335_v36  ;;  %v336_v39 = vmul.f32 %v334_v37, %v334_v37 }
 0x1c4   :  { %v339_v40 = vsel %vm323_vm13, %v337_v38, 0.0  ;;  %v338_v41 = vsel %vm323_vm13, %v336_v39, 0.0  ;;  %v1024_v38 = vunpack.i.l.bf16 %v1023_v33 }
 0x1c5   :  { %v340_v42 = vadd.f32 %v339_v40, %v338_v41  ;;  %v455_v40 = vmul.f32 %v1025_v35, %v453_v34  ;;  %v1032_v41 = vld [vmem:[%s1477_s18] ss:$0 sm:$0xff] }
 0x1c7   :  { %v341_v43 = vrot.slane %v340_v42, 4 }
 0x1c9   :  { %v342_v44 = vadd.f32 %v341_v43, %v340_v42  ;;  %v454_v43 = vmul.f32 %v1024_v38, %v453_v34 }
 0x1cb   :  { %v343_v45 = vrot.slane %v342_v44, 2 }
 0x1cd   :  { %v344_v46 = vadd.f32 %v343_v45, %v342_v44  ;;  %v403_v45 = vshrl.u32 %v370_v58, 7 }
 0x1cf   :  { %v345_v47 = vrot.slane %v344_v46, 1 }
 0x1d1   :  { %v346_v48 = vadd.f32 %v345_v47, %v344_v46  ;;  %v1347_v46 = vadd.f32 %v1032_v41, %v455_v40  ;;  %v1349_v47 = vadd.f32 %v1032_v41, %v454_v43 }
 0x1d3   :  { %v347_v49 = vmul.f32 0.0625, %v346_v48 }
 0x1d5   :  { %v348_v50 = vadd.f32 1e-05, %v347_v49 }
 0x1d7   :  { %1047 = vrsqrt.f32 %v348_v50  ;;  %vm355_vm15 = vweird.f32 %v348_v50 }
 0x1dd   :  { %v1048_v51 = vpop.eup %1047 }
 0x1de   :  { %v350_v52 = vmul.f32 %v1048_v51, %v348_v50  ;;  %vm356_vm14 = vweird.f32 %v1048_v51 }
 0x1df   :  { %vm357_vm0 = vmor %vm355_vm15, %vm356_vm14 }
 0x1e0   :  { %v351_v53 = vmul.f32 %v1048_v51, %v350_v52  ;;  %v1033_v52 = vld [vmem:[%s1476_s3] ss:$0 sm:$0xff] }
 0x1e1   :  { %vm407_vm10 = vcmp.eq.s32.totalorder %v1033_v52, %v403_v45 }
 0x1e2   :  { %v352_v55 = vmul.f32 0.5, %v351_v53  ;;  %v927_v61 = vsel %vm407_vm10, 1.0, %v1066_v1 }
 0x1e4   :  { %v353_v56 = vsub.f32 1.5, %v352_v55 }
 0x1e6   :  { %v354_v59 = vmul.f32 %v1048_v51, %v353_v56 }
 0x1e8   :  { %v358_v0 = vsel %vm357_vm0, %v1048_v51, %v354_v59  ;;  %v404_v51 = vadd.s32 8, %v403_v45 }
 0x1e9   :  { %v359_v4 = vmul.f32 %v358_v0, %v321_v57 }
 0x1ea   :  { %vm408_vm11 = vcmp.eq.s32.totalorder %v1033_v52, %v404_v51 }
 0x1eb   :  { %v361_v8 = vperm.slane %v359_v4, 0  ;;  %v928_v62 = vsel %vm408_vm11, 1.0, %v1066_v1 }
 0x1ec   :  { %v1362_v0 = vpack.c.bf16 %v928_v62, %v927_v61 }
 0x1ed   :  { %v363_v12 = vmul.f32 %v361_v8, %v334_v37  ;;  %v364_v13 = vmul.f32 %v361_v8, %v335_v36  ;;  %v1020_v36 = vunpack.i.h.bf16 %v1018_v27  ;;  %v456_v37 = vmul.f32 %v1019_v32, %v453_v34 }
 0x1ef   :  { %v1315_v14 = vadd.f32 %v1031_v9, %v363_v12  ;;  %v1317_v15 = vadd.f32 %v1031_v9, %v364_v13  ;;  %v457_v42 = vmul.f32 %v1020_v36, %v453_v34  ;;  %v1344_v44 = vadd.f32 %v1032_v41, %v456_v37  ;;  %v1004_v9 = vld [vmem:[%s1481_s21 + $0x8] sm:$0xff]  ;;  %v1034_v12 = vld [vmem:[%s1478_s20] ss:$0 sm:$0xff] }
 0x1f0   :  { %587 = vmatpush.bf16.msrb.mxu2 %v1004_v9 }
 0x1f1   :  { %v475_v20 = vpack.c.bf16 %v1317_v15, %v1315_v14  ;;  %v1352_v49 = vadd.f32 %v1032_v41, %v457_v42 }
 0x1f3   :  { %490 = vmatpush.bf16.msra.mxu3 %v475_v20  ;;  %v1035_v20 = vld [vmem:[%s1480_s22] ss:$0 sm:$0xff] }
 0x1f4   :  { %588 = vmatpush.bf16.msrb.mxu2 %v1003_v10 }
 0x1f6   :  { %933 = vmatmul.msk.bf16.vlgmr.msra.gmra.mxu3 %vm476_vm7, %v1323_v21 }
 0x206   :  { %934 = vmatmul.msk.bf16.gmra.mxu3 %vm476_vm7, %v1331_v25 }
 0x279   :  { %v492_v26 = vpop.f32.mrf.mxu3 }
 0x27a   :  { %v493_v55 = vadd.f32 %v492_v26, %v1349_v47 }
 0x27c   :  { %v502_v60 = vmax.f32 %v493_v55, 0.0 }
 0x281   :  { %v494_v30 = vpop.f32.mrf.mxu3 }
 0x282   :  { %v495_v53 = vadd.f32 %v494_v30, %v1347_v46 }
 0x284   :  { %v503_v58 = vmax.f32 %v495_v53, 0.0 }
 0x286   :  { %v506_v63 = vpack.c.bf16 %v503_v58, %v502_v60  ;;  %v473_v60 = vld [vmem:[%s1483_s23] sm:$0x1] }
 0x289   :  { %v497_v39 = vpop.f32.mrf.mxu3 }
 0x28a   :  { %v498_v48 = vadd.f32 %v497_v39, %v1344_v44 }
 0x28c   :  { %v504_v56 = vmax.f32 %v498_v48, 0.0 }
 0x291   :  { %v499_v50 = vpop.f32.mrf.mxu3 }
 0x292   :  { %v500_v54 = vadd.f32 %v499_v50, %v1352_v49 }
 0x294   :  { %v505_v57 = vmax.f32 %v500_v54, 0.0 }
 0x296   :  { %v507_v59 = vpack.c.bf16 %v505_v57, %v504_v56 }
 0x298   :  { %517 = vmatpush.bf16.msrb.mxu0 %v507_v59 }
 0x29c   :  { %518 = vmatpush.bf16.msrb.mxu0 %v506_v63 }
 0x29f   :  { %935 = vmatmul.msk.bf16.vlgmr.msrb.gmra.mxu0 %vm323_vm13, %v1362_v0 }
 0x31c   :  { %v520_v4 = vpop.f32.mrf.mxu0 }
 0x31d   :  { %v525_v1 = vadd.f32 %v520_v4, %v1315_v14 }
 0x324   :  { %v522_v5 = vpop.f32.mrf.mxu0 }
 0x325   :  { %v526_v7 = vadd.f32 %v522_v5, %v1317_v15 }
 0x327   :  { %v527_v8 = vpack.c.bf16 %v526_v7, %v525_v1 }
 0x329   :  { %944 = vmatmul.msk.bf16.vlgmr.msrb.gmra.mxu1 %vm323_vm13, %v527_v8 }
 0x3a6   :  { %v555_v11 = vpop.f32.mrf.mxu1 }
 0x3a7   :  { %v556_v13 = vadd.f32 %v1034_v12, %v555_v11 }
 0x3a9   :  { %v560_v16 = vmax.f32 %v556_v13, 0.0 }
 0x3ae   :  { %v557_v14 = vpop.f32.mrf.mxu1 }
 0x3af   :  { %v558_v15 = vadd.f32 %v1034_v12, %v557_v14 }
 0x3b1   :  { %v561_v17 = vmax.f32 %v558_v15, 0.0 }
 0x3b3   :  { %v562_v18 = vpack.c.bf16 %v561_v17, %v560_v16 }
 0x3b5   :  { %953 = vmatmul.msk.bf16.vlgmr.msrb.gmra.mxu2 %vm323_vm13, %v562_v18 }
 0x438   :  { %v590_v19 = vpop.f32.mrf.mxu2 }
 0x439   :  { %v591_v22 = vadd.f32 %v1035_v20, %v590_v19 }
 0x43b   :  { %v595_v26 = vsel %vm323_vm13, %v591_v22, 0.0 }
 0x440   :  { %v592_v23 = vpop.f32.mrf.mxu2 }
 0x441   :  { %v593_v24 = vadd.f32 %v1035_v20, %v592_v23 }
 0x443   :  { %v596_v27 = vsel %vm323_vm13, %v593_v24, 0.0 }
 0x444   :  { %v597_v28 = vadd.f32 %v596_v27, %v595_v26  ;;  %v1007_v26 = vld [vmem:[%s1481_s21 + $0x10] sm:$0xff] }
 0x446   :  { %v598_v29 = vrot.slane %v597_v28, 4 }
 0x448   :  { %v599_v30 = vadd.f32 %v598_v29, %v597_v28  ;;  %v1037_v28 = vld [vmem:[%s1478_s20 + $0x1] ss:$0 sm:$0xff] }
 0x44a   :  { %v600_v31 = vrot.slane %v599_v30, 2 }
 0x44c   :  { %v601_v32 = vadd.f32 %v600_v31, %v599_v30 }
 0x44e   :  { %v602_v33 = vrot.slane %v601_v32, 1 }
 0x450   :  { %v603_v34 = vadd.f32 %v602_v33, %v601_v32 }
 0x452   :  { %v604_v35 = vmul.f32 0.0625, %v603_v34 }
 0x454   :  { %v605_v36 = vsub.f32 %v591_v22, %v604_v35  ;;  %v606_v37 = vsub.f32 %v593_v24, %v604_v35 }
 0x456   :  { %v607_v38 = vmul.f32 %v605_v36, %v605_v36  ;;  %v608_v39 = vmul.f32 %v606_v37, %v606_v37 }
 0x458   :  { %v609_v40 = vsel %vm323_vm13, %v607_v38, 0.0  ;;  %v610_v41 = vsel %vm323_vm13, %v608_v39, 0.0 }
 0x459   :  { %v611_v42 = vadd.f32 %v610_v41, %v609_v40 }
 0x45b   :  { %v612_v43 = vrot.slane %v611_v42, 4 }
 0x45d   :  { %v613_v45 = vadd.f32 %v612_v43, %v611_v42 }
 0x45f   :  { %v614_v48 = vrot.slane %v613_v45, 2 }
 0x461   :  { %v615_v50 = vadd.f32 %v614_v48, %v613_v45 }
 0x463   :  { %v616_v51 = vrot.slane %v615_v50, 1 }
 0x465   :  { %v617_v52 = vadd.f32 %v616_v51, %v615_v50 }
 0x467   :  { %v618_v53 = vmul.f32 0.0625, %v617_v52 }
 0x469   :  { %v619_v54 = vadd.f32 1e-05, %v618_v53 }
 0x46b   :  { %1049 = vrsqrt.f32 %v619_v54  ;;  %vm626_vm14 = vweird.f32 %v619_v54 }
 0x471   :  { %v1050_v55 = vpop.eup %1049 }
 0x472   :  { %v621_v56 = vmul.f32 %v1050_v55, %v619_v54  ;;  %vm627_vm12 = vweird.f32 %v1050_v55 }
 0x473   :  { %vm628_vm15 = vmor %vm626_vm14, %vm627_vm12 }
 0x474   :  { %v622_v57 = vmul.f32 %v1050_v55, %v621_v56 }
 0x476   :  { %v623_v58 = vmul.f32 0.5, %v622_v57 }
 0x478   :  { %v624_v59 = vsub.f32 1.5, %v623_v58 }
 0x47a   :  { %v625_v61 = vmul.f32 %v1050_v55, %v624_v59 }
 0x47c   :  { %v629_v62 = vsel %vm628_vm15, %v1050_v55, %v625_v61 }
 0x47d   :  { %v630_v63 = vmul.f32 %v629_v62, %v473_v60 }
 0x47f   :  { %v632_v2 = vperm.slane %v630_v63, 0  ;;  %v1010_v63 = vld [vmem:[%s1485_s25 + $0x8] sm:$0xff] }
 0x481   :  { %v634_v4 = vmul.f32 %v632_v2, %v605_v36  ;;  %v635_v5 = vmul.f32 %v632_v2, %v606_v37  ;;  %v1038_v36 = vld [vmem:[%s1480_s22 + $0x1] ss:$0 sm:$0xff] }
 0x483   :  { %v640_v1 = vadd.f32 %v1036_v3, %v635_v5  ;;  %v639_v7 = vadd.f32 %v1036_v3, %v634_v4  ;;  %v1009_v4 = vld [vmem:[%s1485_s25] sm:$0xff] }
 0x485   :  { %v659_v8 = vpack.c.bf16 %v640_v1, %v639_v7 }
 0x487   :  { %667 = vmatpush.bf16.msra.mxu0 %v659_v8 }
 0x48a   :  { %966 = vmatmul.msk.bf16.vlgmr.msra.gmra.mxu0 %vm476_vm7, %v1323_v21 }
 0x49a   :  { %967 = vmatmul.msk.bf16.gmra.mxu0 %vm476_vm7, %v1331_v25  ;;  %v1006_v25 = vld [vmem:[%s1479_s19 + $0x18] sm:$0xff] }
 0x49b   :  { %726 = vmatpush.bf16.msra.mxu2 %v1006_v25 }
 0x507   :  { %v669_v9 = vpop.f32.mrf.mxu0 }
 0x508   :  { %v670_v16 = vadd.f32 %v669_v9, %v1349_v47 }
 0x50a   :  { %v679_v21 = vmax.f32 %v670_v16, 0.0 }
 0x50f   :  { %v671_v10 = vpop.f32.mrf.mxu0 }
 0x510   :  { %v672_v14 = vadd.f32 %v671_v10, %v1347_v46  ;;  %v1008_v46 = vld [vmem:[%s1481_s21 + $0x18] sm:$0xff] }
 0x511   :  { %761 = vmatpush.bf16.msrb.mxu3 %v1008_v46  ;;  %v1040_v46 = vld [vmem:[%s1484_s26] ss:$0 sm:$0xff] }
 0x512   :  { %v680_v19 = vmax.f32 %v672_v14, 0.0  ;;  %v964_v14 = vld [vmem:[%s1483_s23 + $0x1] sm:$0x1] }
 0x514   :  { %v683_v22 = vpack.c.bf16 %v680_v19, %v679_v21  ;;  %v1039_v19 = vld [vmem:[%s1482_s24 + $0x1] ss:$0 sm:$0xff] }
 0x515   :  { %762 = vmatpush.bf16.msrb.mxu3 %v1007_v26 }
 0x517   :  { %v674_v11 = vpop.f32.mrf.mxu0 }
 0x518   :  { %v675_v12 = vadd.f32 %v674_v11, %v1344_v44  ;;  %v1005_v44 = vld [vmem:[%s1479_s19 + $0x10] sm:$0xff] }
 0x519   :  { %727 = vmatpush.bf16.msra.mxu2 %v1005_v44 }
 0x51a   :  { %v681_v17 = vmax.f32 %v675_v12, 0.0 }
 0x51f   :  { %v676_v13 = vpop.f32.mrf.mxu0 }
 0x520   :  { %v677_v15 = vadd.f32 %v676_v13, %v1352_v49 }
 0x522   :  { %v682_v18 = vmax.f32 %v677_v15, 0.0 }
 0x524   :  { %v684_v20 = vpack.c.bf16 %v682_v18, %v681_v17 }
 0x526   :  { %691 = vmatpush.bf16.msra.mxu1 %v684_v20 }
 0x52a   :  { %692 = vmatpush.bf16.msra.mxu1 %v683_v22 }
 0x52d   :  { %968 = vmatmul.msk.bf16.vlgmr.msra.gmra.mxu1 %vm323_vm13, %v1362_v0 }
 0x52e   :  { %845 = vmatpush.bf16.msrb.mxu1 %v1010_v63 }
 0x532   :  { %846 = vmatpush.bf16.msrb.mxu1 %v1009_v4 }
 0x5aa   :  { %v694_v47 = vpop.f32.mrf.mxu1 }
 0x5ab   :  { %v699_v23 = vadd.f32 %v694_v47, %v639_v7 }
 0x5b2   :  { %v696_v49 = vpop.f32.mrf.mxu1 }
 0x5b3   :  { %v700_v24 = vadd.f32 %v696_v49, %v640_v1 }
 0x5b5   :  { %v701_v0 = vpack.c.bf16 %v700_v24, %v699_v23 }
 0x5b7   :  { %977 = vmatmul.msk.bf16.vlgmr.msra.gmra.mxu2 %vm323_vm13, %v701_v0 }
 0x63a   :  { %v729_v27 = vpop.f32.mrf.mxu2 }
 0x63b   :  { %v730_v29 = vadd.f32 %v1037_v28, %v729_v27 }
 0x63d   :  { %v734_v32 = vmax.f32 %v730_v29, 0.0 }
 0x642   :  { %v731_v30 = vpop.f32.mrf.mxu2 }
 0x643   :  { %v732_v31 = vadd.f32 %v1037_v28, %v731_v30 }
 0x645   :  { %v735_v33 = vmax.f32 %v732_v31, 0.0 }
 0x647   :  { %v736_v34 = vpack.c.bf16 %v735_v33, %v734_v32 }
 0x649   :  { %986 = vmatmul.msk.bf16.vlgmr.msrb.gmra.mxu3 %vm323_vm13, %v736_v34 }
 0x6cc   :  { %v764_v35 = vpop.f32.mrf.mxu3 }
 0x6cd   :  { %v765_v37 = vadd.f32 %v1038_v36, %v764_v35 }
 0x6cf   :  { %v769_v40 = vsel %vm323_vm13, %v765_v37, 0.0 }
 0x6d4   :  { %v766_v38 = vpop.f32.mrf.mxu3 }
 0x6d5   :  { %v767_v39 = vadd.f32 %v1038_v36, %v766_v38 }
 0x6d7   :  { %v770_v41 = vsel %vm323_vm13, %v767_v39, 0.0 }
 0x6d8   :  { %v771_v42 = vadd.f32 %v770_v41, %v769_v40 }
 0x6da   :  { %v772_v43 = vrot.slane %v771_v42, 4 }
 0x6dc   :  { %v773_v45 = vadd.f32 %v772_v43, %v771_v42 }
 0x6de   :  { %v774_v48 = vrot.slane %v773_v45, 2 }
 0x6e0   :  { %v775_v50 = vadd.f32 %v774_v48, %v773_v45 }
 0x6e2   :  { %v776_v51 = vrot.slane %v775_v50, 1 }
 0x6e4   :  { %v777_v52 = vadd.f32 %v776_v51, %v775_v50 }
 0x6e6   :  { %v778_v53 = vmul.f32 0.0625, %v777_v52 }
 0x6e8   :  { %v779_v54 = vsub.f32 %v765_v37, %v778_v53  ;;  %v780_v55 = vsub.f32 %v767_v39, %v778_v53 }
 0x6ea   :  { %v781_v56 = vmul.f32 %v779_v54, %v779_v54  ;;  %v782_v57 = vmul.f32 %v780_v55, %v780_v55 }
 0x6ec   :  { %v783_v58 = vsel %vm323_vm13, %v781_v56, 0.0  ;;  %v784_v59 = vsel %vm323_vm13, %v782_v57, 0.0 }
 0x6ed   :  { %v785_v60 = vadd.f32 %v784_v59, %v783_v58 }
 0x6ef   :  { %v786_v61 = vrot.slane %v785_v60, 4 }
 0x6f1   :  { %v787_v62 = vadd.f32 %v786_v61, %v785_v60 }
 0x6f3   :  { %v788_v2 = vrot.slane %v787_v62, 2 }
 0x6f5   :  { %v789_v3 = vadd.f32 %v788_v2, %v787_v62 }
 0x6f7   :  { %v790_v5 = vrot.slane %v789_v3, 1 }
 0x6f9   :  { %v791_v1 = vadd.f32 %v790_v5, %v789_v3 }
 0x6fb   :  { %v792_v7 = vmul.f32 0.0625, %v791_v1 }
 0x6fd   :  { %v793_v8 = vadd.f32 1e-05, %v792_v7 }
 0x6ff   :  { %1051 = vrsqrt.f32 %v793_v8  ;;  %vm800_vm1 = vweird.f32 %v793_v8 }
 0x705   :  { %v1052_v9 = vpop.eup %1051 }
 0x706   :  { %v795_v10 = vmul.f32 %v1052_v9, %v793_v8  ;;  %vm801_vm0 = vweird.f32 %v1052_v9 }
 0x707   :  { %vm802_vm2 = vmor %vm800_vm1, %vm801_vm0 }
 0x708   :  { %v796_v11 = vmul.f32 %v1052_v9, %v795_v10 }
 0x70a   :  { %v797_v12 = vmul.f32 0.5, %v796_v11 }
 0x70c   :  { %v798_v13 = vsub.f32 1.5, %v797_v12 }
 0x70e   :  { %v799_v15 = vmul.f32 %v1052_v9, %v798_v13 }
 0x710   :  { %v803_v16 = vsel %vm802_vm2, %v1052_v9, %v799_v15 }
 0x711   :  { %v804_v17 = vmul.f32 %v964_v14, %v803_v16 }
 0x713   :  { %v806_v18 = vperm.slane %v804_v17, 0 }
 0x715   :  { %v808_v20 = vmul.f32 %v806_v18, %v779_v54  ;;  %v809_v21 = vmul.f32 %v806_v18, %v780_v55 }
 0x717   :  { %v813_v22 = vadd.f32 %v1039_v19, %v808_v20  ;;  %v814_v25 = vadd.f32 %v1039_v19, %v809_v21 }
 0x719   :  { %v815_v44 = vpack.c.bf16 %v814_v25, %v813_v22 }
 0x71b   :  { %995 = vmatmul.msk.bf16.vlgmr.msrb.gmra.mxu1 %vm323_vm13, %v815_v44 }
 0x798   :  { %v848_v47 = vpop.f32.mrf.mxu1 }
 0x799   :  { %v849_v49 = vadd.f32 %v1040_v46, %v848_v47 }
 0x79b   :  { %v996_v23 = vmul.f32 -1.442695, %v849_v49  ;;  %v893_v24 = vmin.f32 %v849_v49, 0.0  ;;  %vm891_vm13 = vcmp.gt.f32.partialorder %v849_v49, 0.0 }
 0x79d   :  { %1053 = vpow2.f32 %v996_v23  ;;  %v895_v0 = vmul.f32 1.442695, %v893_v24 }
 0x79f   :  { %1055 = vpow2.f32 %v895_v0 }
 0x7a0   :  { %v850_v26 = vpop.f32.mrf.mxu1 }
 0x7a1   :  { %v851_v27 = vadd.f32 %v1040_v46, %v850_v26 }
 0x7a3   :  { %v1054_v28 = vpop.eup %1053  ;;  %v997_v29 = vmul.f32 -1.442695, %v851_v27  ;;  %v894_v30 = vmin.f32 %v851_v27, 0.0  ;;  %vm892_vm7 = vcmp.gt.f32.partialorder %v851_v27, 0.0 }
 0x7a4   :  { %v859_v31 = vadd.f32 1.0, %v1054_v28 }
 0x7a5   :  { %1057 = vpow2.f32 %v997_v29  ;;  %v897_v32 = vmul.f32 1.442695, %v894_v30  ;;  %v1056_v33 = vpop.eup %1055 }
 0x7a6   :  { %1059 = vrcp.f32 %v859_v31  ;;  %v998_v34 = vadd.f32 -1.0, %v1056_v33  ;;  %v872_v42 = vand.u32 2147483648, %v859_v31  ;;  %v870_v45 = vand.u32 2147483647, %v859_v31 }
 0x7a7   :  { %1061 = vpow2.f32 %v897_v32  ;;  %vm866_vm4 = vweird.f32 %v859_v31 }
 0x7a8   :  { %v901_v39 = vsel %vm891_vm13, %v849_v49, %v998_v34  ;;  %v873_v53 = vor.u32 1.1754944e-38, %v872_v42  ;;  %vm871_vm8 = vcmp.eq.f32.partialorder %v870_v45, 8.507059e+37 }
 0x7a9   :  { %v903_v48 = vadd.f32 1.0, %v901_v39 }
 0x7ab   :  { %v1058_v35 = vpop.eup %1057  ;;  %v905_v55 = vadd.f32 1e-14, %v903_v48 }
 0x7ac   :  { %v1060_v36 = vpop.eup %1059  ;;  %v860_v37 = vadd.f32 1.0, %v1058_v35 }
 0x7ad   :  { %v862_v38 = vmul.f32 %v1060_v36, %v859_v31  ;;  %v1062_v40 = vpop.eup %1061  ;;  %vm867_vm3 = vweird.f32 %v1060_v36 }
 0x7ae   :  { %1063 = vrcp.f32 %v860_v37  ;;  %v999_v50 = vadd.f32 -1.0, %v1062_v40  ;;  %vm868_vm5 = vmor %vm866_vm4, %vm867_vm3  ;;  %v887_v61 = vand.u32 2147483648, %v860_v37  ;;  %v885_v63 = vand.u32 2147483647, %v860_v37 }
 0x7af   :  { %v863_v41 = vsub.f32 1.0, %v862_v38  ;;  %vm881_vm10 = vweird.f32 %v860_v37 }
 0x7b0   :  { %v902_v58 = vsel %vm892_vm7, %v851_v27, %v999_v50  ;;  %v888_v4 = vor.u32 1.1754944e-38, %v887_v61  ;;  %vm886_vm12 = vcmp.eq.f32.partialorder %v885_v63, 8.507059e+37 }
 0x7b1   :  { %v864_v43 = vmul.f32 %v1060_v36, %v863_v41  ;;  %v904_v2 = vadd.f32 1.0, %v902_v58 }
 0x7b3   :  { %v865_v51 = vadd.f32 %v1060_v36, %v864_v43  ;;  %v906_v1 = vadd.f32 1e-14, %v904_v2 }
 0x7b4   :  { %v1064_v52 = vpop.eup %1063 }
 0x7b5   :  { %v869_v54 = vsel %vm868_vm5, %v1060_v36, %v865_v51  ;;  %v877_v56 = vmul.f32 %v1064_v52, %v860_v37  ;;  %vm882_vm9 = vweird.f32 %v1064_v52 }
 0x7b6   :  { %v874_v57 = vsel %vm871_vm8, %v873_v53, %v869_v54  ;;  %vm883_vm11 = vmor %vm881_vm10, %vm882_vm9 }
 0x7b7   :  { %v908_v59 = vsel %vm907_vm6, %v874_v57, %v905_v55  ;;  %v878_v60 = vsub.f32 1.0, %v877_v56 }
 0x7b8   :  { %910 = vst [vmem:[%s1486_s27] sm:$0xff] %v908_v59 }
 0x7b9   :  { %v879_v62 = vmul.f32 %v1064_v52, %v878_v60 }
 0x7bb   :  { %v880_v3 = vadd.f32 %v1064_v52, %v879_v62 }
 0x7bd   :  { %v884_v5 = vsel %vm883_vm11, %v1064_v52, %v880_v3 }
 0x7be   :  { %v889_v7 = vsel %vm886_vm12, %v888_v4, %v884_v5 }
 0x7bf   :  { %v909_v8 = vsel %vm907_vm6, %v889_v7, %v906_v1 }
 0x7c0   :  { %911 = vst [vmem:[%s1486_s27 + $0x8] sm:$0xff] %v909_v8 }

</bundles_post_ra>
